<compile_context>
chip_gen: v6e
topology: v6e:2x2x1
jax: 0.10.0
libtpu: 0.0.40
codegen_flags: <defaults>
</compile_context>

<pallas_src>
import jax
import jax.numpy as jnp
from jax import lax
from jax.experimental import pallas as pl
from jax.experimental.pallas import tpu as pltpu


def lstm_chunk_kernel(x_ref, w_ih_ref, w_hh_ref, b_ref, h_out_ref, h_ref, c_ref):
    """Run TC LSTM steps for one (batch-tile, time-chunk) grid cell.

    x_ref    : (TC, BB, E)   time-major embedded inputs for this chunk
    w_ih_ref : (E, 4H)       fused input->gate weights, gate order [i, f, g, o]
    w_hh_ref : (H, 4H)       fused hidden->gate weights
    b_ref    : (1, 4H)       fused bias (b_ih + b_hh)
    h_out_ref: (TC, BB, H)   hidden states for this chunk (output)
    h_ref/c_ref : (BB, H)    VMEM scratch, persistent LSTM state across time chunks
    """
    t_chunk = pl.program_id(1)

    # New batch tile starts at time-chunk 0: reset the recurrent state.
    @pl.when(t_chunk == 0)
    def _():
        h_ref[...] = jnp.zeros_like(h_ref)
        c_ref[...] = jnp.zeros_like(c_ref)

    tc = x_ref.shape[0]
    hid = h_ref.shape[-1]

    # Load weights once per grid iteration; reused across all TC steps.
    w_ih = w_ih_ref[...]        # (E, 4H)
    w_hh = w_hh_ref[...]        # (H, 4H)
    b = b_ref[...]              # (1, 4H)

    def step(t, carry):
        x_t = x_ref[t]          # (BB, E) — dynamic index on leading (untiled) axis
        h_prev = h_ref[...]     # (BB, H)

        # One fused, lane-dense (BB, 4H) gate pre-activation: 2 MXU matmuls + 1 add.
        gates = (jnp.dot(x_t, w_ih, preferred_element_type=jnp.float32)
                 + jnp.dot(h_prev, w_hh, preferred_element_type=jnp.float32)
                 + b)

        i = jax.nn.sigmoid(gates[:, 0 * hid:1 * hid])
        f = jax.nn.sigmoid(gates[:, 1 * hid:2 * hid])
        g = jnp.tanh(gates[:, 2 * hid:3 * hid])
        o = jax.nn.sigmoid(gates[:, 3 * hid:4 * hid])

        c_new = f * c_ref[...] + i * g
        h_new = o * jnp.tanh(c_new)

        c_ref[...] = c_new
        h_ref[...] = h_new
        h_out_ref[t] = h_new     # store hidden state; FC happens outside the kernel
        return carry

    lax.fori_loop(0, tc, step, 0, unroll=(tc <= 16))


def emb_seq_lstm_forward(seq_ids, mask, params, *, time_chunk=8):
    """Pallas implementation of EmbSeqLSTM.forward (batch_first output)."""
    # lengths is computed in the PyTorch forward but does not affect the output
    # (the module feeds the raw embedded sequence to nn.LSTM, no packing).
    _lengths = jnp.sum(mask, axis=1)

    B, T = seq_ids.shape
    E = params["emb"].shape[1]
    H = params["w_hh"].shape[0]

    # --- pad batch to a sublane-aligned tile and time to a chunk multiple -------
    BB = 128 if B >= 128 else 8 * pl.cdiv(B, 8)      # batch tile (>= 8, sublane aligned)
    Bp = BB * pl.cdiv(B, BB)
    TC = min(time_chunk, T)
    Tp = TC * pl.cdiv(T, TC)

    # Pad ids with index 0 (the padding row, which embeds to zeros).  Padded batch
    # rows / trailing timesteps are dead work and are stripped after the kernel.
    ids = jnp.pad(seq_ids, ((0, Bp - B), (0, Tp - T)))

    # Gather embeddings directly time-major: transpose the tiny id matrix, not the
    # (T, B, E) activation tensor.
    x_tbe = jnp.take(params["emb"], ids.T, axis=0)    # (Tp, Bp, E)

    nb, nt = Bp // BB, Tp // TC

    h_tbh = pl.pallas_call(
        lstm_chunk_kernel,
        out_shape=jax.ShapeDtypeStruct((Tp, Bp, H), jnp.float32),
        grid_spec=pltpu.PrefetchScalarGridSpec(
            num_scalar_prefetch=0,
            grid=(nb, nt),                              # (batch tiles, time chunks)
            in_specs=[
                pl.BlockSpec((TC, BB, E), lambda b, t: (t, b, 0)),   # x chunk
                pl.BlockSpec((E, 4 * H), lambda b, t: (0, 0)),       # fused w_ih
                pl.BlockSpec((H, 4 * H), lambda b, t: (0, 0)),       # fused w_hh
                pl.BlockSpec((1, 4 * H), lambda b, t: (0, 0)),       # fused bias
            ],
            out_specs=pl.BlockSpec((TC, BB, H), lambda b, t: (t, b, 0)),
            scratch_shapes=[
                pltpu.VMEM((BB, H), jnp.float32),       # h state
                pltpu.VMEM((BB, H), jnp.float32),       # c state
            ],
        ),
        compiler_params=pltpu.CompilerParams(
            # batch tiles independent (v7x 2-core sharding); time recurrence sequential
            dimension_semantics=("parallel", "arbitrary")),
    )(x_tbe, params["w_ih"], params["w_hh"], params["b"])

    # One large FC outside the recurrence; the back-to-batch-first layout is fused
    # into this contraction instead of a standalone activation transpose.
    out = jnp.einsum("tbh,ho->bto", h_tbh, params["w_fc"]) + params["b_fc"]
    return out[:B, :T, :]                               # strip batch/time padding


def init_params(key, vocab_size, emb_size, hidden_size, label_num, pad_index=0):
    """Deterministic synthetic parameters mirroring the PyTorch module's shapes.

    PyTorch stores weight_ih (4H, E), weight_hh (4H, H), b_ih/b_hh (4H,) with gate
    order [i, f, g, o]; here they are pre-fused and pre-transposed to (E, 4H),
    (H, 4H) and a single (1, 4H) bias so the kernel does one lane-dense matmul pair.
    """
    ks = jax.random.split(key, 7)
    H, E = hidden_size, emb_size
    O = label_num + 2
    bound = 1.0 / jnp.sqrt(jnp.float32(H))

    emb = jax.random.normal(ks[0], (vocab_size, E), dtype=jnp.float32)
    emb = emb.at[pad_index].set(0.0)                    # padding row

    w_ih = jax.random.uniform(ks[1], (E, 4 * H), jnp.float32, -bound, bound)
    w_hh = jax.random.uniform(ks[2], (H, 4 * H), jnp.float32, -bound, bound)
    b_ih = jax.random.uniform(ks[3], (1, 4 * H), jnp.float32, -bound, bound)
    b_hh = jax.random.uniform(ks[4], (1, 4 * H), jnp.float32, -bound, bound)
    b = b_ih + b_hh

    # nn.Linear(H, O): weight (O, H), bias (O,) — stored transposed as (H, O), (1, O).
    w_fc = jax.random.uniform(ks[5], (H, O), jnp.float32, -bound, bound)
    b_fc = jax.random.uniform(ks[6], (1, O), jnp.float32, -bound, bound)

    return dict(emb=emb, w_ih=w_ih, w_hh=w_hh, b=b, w_fc=w_fc, b_fc=b_fc)


def reference_forward(seq_ids, params):
    """Pure-JAX reference (lax.scan LSTM) for correctness checking."""
    x = jnp.take(params["emb"], seq_ids, axis=0)        # (B, T, E)
    B, T, E = x.shape
    H = params["w_hh"].shape[0]

    def step(carry, x_t):
        h, c = carry
        gates = x_t @ params["w_ih"] + h @ params["w_hh"] + params["b"]
        i = jax.nn.sigmoid(gates[:, 0 * H:1 * H])
        f = jax.nn.sigmoid(gates[:, 1 * H:2 * H])
        g = jnp.tanh(gates[:, 2 * H:3 * H])
        o = jax.nn.sigmoid(gates[:, 3 * H:4 * H])
        c = f * c + i * g
        h = o * jnp.tanh(c)
        return (h, c), h

    init = (jnp.zeros((B, H), jnp.float32), jnp.zeros((B, H), jnp.float32))
    _, hs = lax.scan(step, init, jnp.transpose(x, (1, 0, 2)))
    hs = jnp.transpose(hs, (1, 0, 2))                    # (B, T, H)
    return hs @ params["w_fc"] + params["b_fc"]


if __name__ == "__main__":
    # Small shapes consistent with the module's forward.
    B, T = 2, 8            # batch, seq_len
    V, E = 20, 16          # vocab_size, emb_size
    H = 32                 # hidden_size
    LABEL_NUM = 5          # -> output dim = label_num + 2 = 7
    PAD_INDEX = 0

    key = jax.random.PRNGKey(0)
    k_params, k_ids = jax.random.split(key)

    params = init_params(k_params, V, E, H, LABEL_NUM, PAD_INDEX)

    seq_ids = jax.random.randint(k_ids, (B, T), 0, V, dtype=jnp.int32)
    mask = jnp.ones((B, T), dtype=jnp.int32)

    out = emb_seq_lstm_forward(seq_ids, mask, params)
    out = jax.block_until_ready(out)

    ref = reference_forward(seq_ids, params)
    assert out.shape == (B, T, LABEL_NUM + 2), out.shape
    assert jnp.allclose(out, ref, atol=1e-5, rtol=1e-5), \
        f"max abs diff {jnp.max(jnp.abs(out - ref))}"

    print("KERNEL_OK")
</pallas_src>

<mosaic_0001>
module attributes {stable_mosaic.version = 11 : i64} {
  func.func @lstm_chunk_kernel(%arg0: i32, %arg1: i32, %arg2: memref<8x8x16xf32, #tpu.memory_space<vmem>>, %arg3: memref<16x128xf32, #tpu.memory_space<vmem>>, %arg4: memref<32x128xf32, #tpu.memory_space<vmem>>, %arg5: memref<1x128xf32, #tpu.memory_space<vmem>>, %arg6: memref<8x8x32xf32, #tpu.memory_space<vmem>>, %arg7: memref<8x32xf32, #tpu.memory_space<vmem>>, %arg8: memref<8x32xf32, #tpu.memory_space<vmem>>) attributes {dimension_semantics = [#tpu.dimension_semantics<parallel>, #tpu.dimension_semantics<arbitrary>], iteration_bounds = array<i64: 1, 1>, scalar_prefetch = 0 : i64, scratch_operands = 2 : i64, tpu.core_type = #tpu.core_type<tc>, window_params = [{transform_indices = @transform_0, window_bounds = array<i64: 8, 8, 16>}, {pipeline_mode = #tpu.pipeline_mode<synchronous>, transform_indices = @transform_1, window_bounds = array<i64: 16, 128>}, {pipeline_mode = #tpu.pipeline_mode<synchronous>, transform_indices = @transform_2, window_bounds = array<i64: 32, 128>}, {pipeline_mode = #tpu.pipeline_mode<synchronous>, transform_indices = @transform_3, window_bounds = array<i64: 1, 128>}, {transform_indices = @transform_4, window_bounds = array<i64: 8, 8, 32>}]} {
    %c0_i32 = arith.constant 0 : i32
    %0 = arith.cmpi eq, %arg1, %c0_i32 : i32
    %1 = arith.extui %0 : i1 to i32
    %c0_i32_0 = arith.constant 0 : i32
    %2 = arith.cmpi ne, %1, %c0_i32_0 : i32
    scf.if %2 {
      %cst_142 = arith.constant 0.000000e+00 : f32
      %334 = vector.broadcast %cst_142 : f32 to vector<8x32xf32>
      %c0_143 = arith.constant 0 : index
      %c0_144 = arith.constant 0 : index
      %335 = vector.load %arg7[%c0_143, %c0_144] : memref<8x32xf32, #tpu.memory_space<vmem>>, vector<8x32xf32>
      tpu.vector_store %arg7[%c0_143, %c0_144], %334 {strides = array<i32>} : memref<8x32xf32, #tpu.memory_space<vmem>>, vector<8x32xf32>,
      %cst_145 = arith.constant 0.000000e+00 : f32
      %336 = vector.broadcast %cst_145 : f32 to vector<8x32xf32>
      %c0_146 = arith.constant 0 : index
      %c0_147 = arith.constant 0 : index
      %337 = vector.load %arg8[%c0_146, %c0_147] : memref<8x32xf32, #tpu.memory_space<vmem>>, vector<8x32xf32>
      tpu.vector_store %arg8[%c0_146, %c0_147], %336 {strides = array<i32>} : memref<8x32xf32, #tpu.memory_space<vmem>>, vector<8x32xf32>,
    } else {
    }
    %c0 = arith.constant 0 : index
    %c0_1 = arith.constant 0 : index
    %3 = vector.load %arg3[%c0, %c0_1] : memref<16x128xf32, #tpu.memory_space<vmem>>, vector<16x128xf32>
    %c0_2 = arith.constant 0 : index
    %c0_3 = arith.constant 0 : index
    %4 = vector.load %arg4[%c0_2, %c0_3] : memref<32x128xf32, #tpu.memory_space<vmem>>, vector<32x128xf32>
    %c0_4 = arith.constant 0 : index
    %c0_5 = arith.constant 0 : index
    %5 = vector.load %arg5[%c0_4, %c0_5] : memref<1x128xf32, #tpu.memory_space<vmem>>, vector<1x128xf32>
    %c0_i32_6 = arith.constant 0 : i32
    %6 = arith.index_cast %c0_i32_6 : i32 to index
    %c0_7 = arith.constant 0 : index
    %c0_8 = arith.constant 0 : index
    %7 = vector.load %arg2[%6, %c0_7, %c0_8] : memref<8x8x16xf32, #tpu.memory_space<vmem>>, vector<1x8x16xf32>
    %8 = vector.shape_cast %7 : vector<1x8x16xf32> to vector<8x16xf32>
    %c0_9 = arith.constant 0 : index
    %c0_10 = arith.constant 0 : index
    %9 = vector.load %arg7[%c0_9, %c0_10] : memref<8x32xf32, #tpu.memory_space<vmem>>, vector<8x32xf32>
    %cst = arith.constant dense<0.000000e+00> : vector<8x128xf32>
    %10 = tpu.matmul %8, %3, %cst {dimension_numbers = #tpu.dot_dimension_numbers<[1], [0], [0], [1], [0, 0, 1, 1], [], []>} : vector<8x16xf32>, vector<16x128xf32>, vector<8x128xf32> -> vector<8x128xf32>
    %cst_11 = arith.constant dense<0.000000e+00> : vector<8x128xf32>
    %11 = tpu.matmul %9, %4, %cst_11 {dimension_numbers = #tpu.dot_dimension_numbers<[1], [0], [0], [1], [0, 0, 1, 1], [], []>} : vector<8x32xf32>, vector<32x128xf32>, vector<8x128xf32> -> vector<8x128xf32>
    %12 = arith.addf %10, %11 : vector<8x128xf32>
    %13 = vector.broadcast %5 : vector<1x128xf32> to vector<8x128xf32>
    %14 = arith.addf %12, %13 : vector<8x128xf32>
    %15 = vector.extract_strided_slice %14 {offsets = [0, 0], sizes = [8, 32], strides = [1, 1]} : vector<8x128xf32> to vector<8x32xf32>
    %16 = arith.negf %15 : vector<8x32xf32>
    %17 = math.exp %16 : vector<8x32xf32>
    %cst_12 = arith.constant 1.000000e+00 : f32
    %18 = vector.broadcast %cst_12 : f32 to vector<8x32xf32>
    %19 = arith.addf %18, %17 : vector<8x32xf32>
    %20 = arith.divf %18, %19 : vector<8x32xf32>
    %21 = vector.extract_strided_slice %14 {offsets = [0, 32], sizes = [8, 32], strides = [1, 1]} : vector<8x128xf32> to vector<8x32xf32>
    %22 = arith.negf %21 : vector<8x32xf32>
    %23 = math.exp %22 : vector<8x32xf32>
    %cst_13 = arith.constant 1.000000e+00 : f32
    %24 = vector.broadcast %cst_13 : f32 to vector<8x32xf32>
    %25 = arith.addf %24, %23 : vector<8x32xf32>
    %26 = arith.divf %24, %25 : vector<8x32xf32>
    %27 = vector.extract_strided_slice %14 {offsets = [0, 64], sizes = [8, 32], strides = [1, 1]} : vector<8x128xf32> to vector<8x32xf32>
    %28 = math.tanh %27 : vector<8x32xf32>
    %29 = vector.extract_strided_slice %14 {offsets = [0, 96], sizes = [8, 32], strides = [1, 1]} : vector<8x128xf32> to vector<8x32xf32>
    %30 = arith.negf %29 : vector<8x32xf32>
    %31 = math.exp %30 : vector<8x32xf32>
    %cst_14 = arith.constant 1.000000e+00 : f32
    %32 = vector.broadcast %cst_14 : f32 to vector<8x32xf32>
    %33 = arith.addf %32, %31 : vector<8x32xf32>
    %34 = arith.divf %32, %33 : vector<8x32xf32>
    %c0_15 = arith.constant 0 : index
    %c0_16 = arith.constant 0 : index
    %35 = vector.load %arg8[%c0_15, %c0_16] : memref<8x32xf32, #tpu.memory_space<vmem>>, vector<8x32xf32>
    %36 = arith.mulf %26, %35 : vector<8x32xf32>
    %37 = arith.mulf %20, %28 : vector<8x32xf32>
    %38 = arith.addf %36, %37 : vector<8x32xf32>
    %39 = math.tanh %38 : vector<8x32xf32>
    %40 = arith.mulf %34, %39 : vector<8x32xf32>
    %c0_17 = arith.constant 0 : index
    %c0_18 = arith.constant 0 : index
    %41 = vector.load %arg8[%c0_17, %c0_18] : memref<8x32xf32, #tpu.memory_space<vmem>>, vector<8x32xf32>
    tpu.vector_store %arg8[%c0_17, %c0_18], %38 {strides = array<i32>} : memref<8x32xf32, #tpu.memory_space<vmem>>, vector<8x32xf32>,
    %c0_19 = arith.constant 0 : index
    %c0_20 = arith.constant 0 : index
    %42 = vector.load %arg7[%c0_19, %c0_20] : memref<8x32xf32, #tpu.memory_space<vmem>>, vector<8x32xf32>
    tpu.vector_store %arg7[%c0_19, %c0_20], %40 {strides = array<i32>} : memref<8x32xf32, #tpu.memory_space<vmem>>, vector<8x32xf32>,
    %43 = arith.index_cast %c0_i32_6 : i32 to index
    %c0_21 = arith.constant 0 : index
    %c0_22 = arith.constant 0 : index
    %44 = vector.load %arg6[%43, %c0_21, %c0_22] : memref<8x8x32xf32, #tpu.memory_space<vmem>>, vector<1x8x32xf32>
    %45 = vector.shape_cast %44 : vector<1x8x32xf32> to vector<8x32xf32>
    %46 = vector.shape_cast %40 : vector<8x32xf32> to vector<1x8x32xf32>
    tpu.vector_store %arg6[%43, %c0_21, %c0_22], %46 {strides = array<i32>} : memref<8x8x32xf32, #tpu.memory_space<vmem>>, vector<1x8x32xf32>,
    %c1_i32 = arith.constant 1 : i32
    %47 = arith.index_cast %c1_i32 : i32 to index
    %c0_23 = arith.constant 0 : index
    %c0_24 = arith.constant 0 : index
    %48 = vector.load %arg2[%47, %c0_23, %c0_24] : memref<8x8x16xf32, #tpu.memory_space<vmem>>, vector<1x8x16xf32>
    %49 = vector.shape_cast %48 : vector<1x8x16xf32> to vector<8x16xf32>
    %c0_25 = arith.constant 0 : index
    %c0_26 = arith.constant 0 : index
    %50 = vector.load %arg7[%c0_25, %c0_26] : memref<8x32xf32, #tpu.memory_space<vmem>>, vector<8x32xf32>
    %cst_27 = arith.constant dense<0.000000e+00> : vector<8x128xf32>
    %51 = tpu.matmul %49, %3, %cst_27 {dimension_numbers = #tpu.dot_dimension_numbers<[1], [0], [0], [1], [0, 0, 1, 1], [], []>} : vector<8x16xf32>, vector<16x128xf32>, vector<8x128xf32> -> vector<8x128xf32>
    %cst_28 = arith.constant dense<0.000000e+00> : vector<8x128xf32>
    %52 = tpu.matmul %50, %4, %cst_28 {dimension_numbers = #tpu.dot_dimension_numbers<[1], [0], [0], [1], [0, 0, 1, 1], [], []>} : vector<8x32xf32>, vector<32x128xf32>, vector<8x128xf32> -> vector<8x128xf32>
    %53 = arith.addf %51, %52 : vector<8x128xf32>
    %54 = vector.broadcast %5 : vector<1x128xf32> to vector<8x128xf32>
    %55 = arith.addf %53, %54 : vector<8x128xf32>
    %56 = vector.extract_strided_slice %55 {offsets = [0, 0], sizes = [8, 32], strides = [1, 1]} : vector<8x128xf32> to vector<8x32xf32>
    %57 = arith.negf %56 : vector<8x32xf32>
    %58 = math.exp %57 : vector<8x32xf32>
    %cst_29 = arith.constant 1.000000e+00 : f32
    %59 = vector.broadcast %cst_29 : f32 to vector<8x32xf32>
    %60 = arith.addf %59, %58 : vector<8x32xf32>
    %61 = arith.divf %59, %60 : vector<8x32xf32>
    %62 = vector.extract_strided_slice %55 {offsets = [0, 32], sizes = [8, 32], strides = [1, 1]} : vector<8x128xf32> to vector<8x32xf32>
    %63 = arith.negf %62 : vector<8x32xf32>
    %64 = math.exp %63 : vector<8x32xf32>
    %cst_30 = arith.constant 1.000000e+00 : f32
    %65 = vector.broadcast %cst_30 : f32 to vector<8x32xf32>
    %66 = arith.addf %65, %64 : vector<8x32xf32>
    %67 = arith.divf %65, %66 : vector<8x32xf32>
    %68 = vector.extract_strided_slice %55 {offsets = [0, 64], sizes = [8, 32], strides = [1, 1]} : vector<8x128xf32> to vector<8x32xf32>
    %69 = math.tanh %68 : vector<8x32xf32>
    %70 = vector.extract_strided_slice %55 {offsets = [0, 96], sizes = [8, 32], strides = [1, 1]} : vector<8x128xf32> to vector<8x32xf32>
    %71 = arith.negf %70 : vector<8x32xf32>
    %72 = math.exp %71 : vector<8x32xf32>
    %cst_31 = arith.constant 1.000000e+00 : f32
    %73 = vector.broadcast %cst_31 : f32 to vector<8x32xf32>
    %74 = arith.addf %73, %72 : vector<8x32xf32>
    %75 = arith.divf %73, %74 : vector<8x32xf32>
    %c0_32 = arith.constant 0 : index
    %c0_33 = arith.constant 0 : index
    %76 = vector.load %arg8[%c0_32, %c0_33] : memref<8x32xf32, #tpu.memory_space<vmem>>, vector<8x32xf32>
    %77 = arith.mulf %67, %76 : vector<8x32xf32>
    %78 = arith.mulf %61, %69 : vector<8x32xf32>
    %79 = arith.addf %77, %78 : vector<8x32xf32>
    %80 = math.tanh %79 : vector<8x32xf32>
    %81 = arith.mulf %75, %80 : vector<8x32xf32>
    %c0_34 = arith.constant 0 : index
    %c0_35 = arith.constant 0 : index
    %82 = vector.load %arg8[%c0_34, %c0_35] : memref<8x32xf32, #tpu.memory_space<vmem>>, vector<8x32xf32>
    tpu.vector_store %arg8[%c0_34, %c0_35], %79 {strides = array<i32>} : memref<8x32xf32, #tpu.memory_space<vmem>>, vector<8x32xf32>,
    %c0_36 = arith.constant 0 : index
    %c0_37 = arith.constant 0 : index
    %83 = vector.load %arg7[%c0_36, %c0_37] : memref<8x32xf32, #tpu.memory_space<vmem>>, vector<8x32xf32>
    tpu.vector_store %arg7[%c0_36, %c0_37], %81 {strides = array<i32>} : memref<8x32xf32, #tpu.memory_space<vmem>>, vector<8x32xf32>,
    %84 = arith.index_cast %c1_i32 : i32 to index
    %c0_38 = arith.constant 0 : index
    %c0_39 = arith.constant 0 : index
    %85 = vector.load %arg6[%84, %c0_38, %c0_39] : memref<8x8x32xf32, #tpu.memory_space<vmem>>, vector<1x8x32xf32>
    %86 = vector.shape_cast %85 : vector<1x8x32xf32> to vector<8x32xf32>
    %87 = vector.shape_cast %81 : vector<8x32xf32> to vector<1x8x32xf32>
    tpu.vector_store %arg6[%84, %c0_38, %c0_39], %87 {strides = array<i32>} : memref<8x8x32xf32, #tpu.memory_space<vmem>>, vector<1x8x32xf32>,
    %c2_i32 = arith.constant 2 : i32
    %88 = arith.index_cast %c2_i32 : i32 to index
    %c0_40 = arith.constant 0 : index
    %c0_41 = arith.constant 0 : index
    %89 = vector.load %arg2[%88, %c0_40, %c0_41] : memref<8x8x16xf32, #tpu.memory_space<vmem>>, vector<1x8x16xf32>
    %90 = vector.shape_cast %89 : vector<1x8x16xf32> to vector<8x16xf32>
    %c0_42 = arith.constant 0 : index
    %c0_43 = arith.constant 0 : index
    %91 = vector.load %arg7[%c0_42, %c0_43] : memref<8x32xf32, #tpu.memory_space<vmem>>, vector<8x32xf32>
    %cst_44 = arith.constant dense<0.000000e+00> : vector<8x128xf32>
    %92 = tpu.matmul %90, %3, %cst_44 {dimension_numbers = #tpu.dot_dimension_numbers<[1], [0], [0], [1], [0, 0, 1, 1], [], []>} : vector<8x16xf32>, vector<16x128xf32>, vector<8x128xf32> -> vector<8x128xf32>
    %cst_45 = arith.constant dense<0.000000e+00> : vector<8x128xf32>
    %93 = tpu.matmul %91, %4, %cst_45 {dimension_numbers = #tpu.dot_dimension_numbers<[1], [0], [0], [1], [0, 0, 1, 1], [], []>} : vector<8x32xf32>, vector<32x128xf32>, vector<8x128xf32> -> vector<8x128xf32>
    %94 = arith.addf %92, %93 : vector<8x128xf32>
    %95 = vector.broadcast %5 : vector<1x128xf32> to vector<8x128xf32>
    %96 = arith.addf %94, %95 : vector<8x128xf32>
    %97 = vector.extract_strided_slice %96 {offsets = [0, 0], sizes = [8, 32], strides = [1, 1]} : vector<8x128xf32> to vector<8x32xf32>
    %98 = arith.negf %97 : vector<8x32xf32>
    %99 = math.exp %98 : vector<8x32xf32>
    %cst_46 = arith.constant 1.000000e+00 : f32
    %100 = vector.broadcast %cst_46 : f32 to vector<8x32xf32>
    %101 = arith.addf %100, %99 : vector<8x32xf32>
    %102 = arith.divf %100, %101 : vector<8x32xf32>
    %103 = vector.extract_strided_slice %96 {offsets = [0, 32], sizes = [8, 32], strides = [1, 1]} : vector<8x128xf32> to vector<8x32xf32>
    %104 = arith.negf %103 : vector<8x32xf32>
    %105 = math.exp %104 : vector<8x32xf32>
    %cst_47 = arith.constant 1.000000e+00 : f32
    %106 = vector.broadcast %cst_47 : f32 to vector<8x32xf32>
    %107 = arith.addf %106, %105 : vector<8x32xf32>
    %108 = arith.divf %106, %107 : vector<8x32xf32>
    %109 = vector.extract_strided_slice %96 {offsets = [0, 64], sizes = [8, 32], strides = [1, 1]} : vector<8x128xf32> to vector<8x32xf32>
    %110 = math.tanh %109 : vector<8x32xf32>
    %111 = vector.extract_strided_slice %96 {offsets = [0, 96], sizes = [8, 32], strides = [1, 1]} : vector<8x128xf32> to vector<8x32xf32>
    %112 = arith.negf %111 : vector<8x32xf32>
    %113 = math.exp %112 : vector<8x32xf32>
    %cst_48 = arith.constant 1.000000e+00 : f32
    %114 = vector.broadcast %cst_48 : f32 to vector<8x32xf32>
    %115 = arith.addf %114, %113 : vector<8x32xf32>
    %116 = arith.divf %114, %115 : vector<8x32xf32>
    %c0_49 = arith.constant 0 : index
    %c0_50 = arith.constant 0 : index
    %117 = vector.load %arg8[%c0_49, %c0_50] : memref<8x32xf32, #tpu.memory_space<vmem>>, vector<8x32xf32>
    %118 = arith.mulf %108, %117 : vector<8x32xf32>
    %119 = arith.mulf %102, %110 : vector<8x32xf32>
    %120 = arith.addf %118, %119 : vector<8x32xf32>
    %121 = math.tanh %120 : vector<8x32xf32>
    %122 = arith.mulf %116, %121 : vector<8x32xf32>
    %c0_51 = arith.constant 0 : index
    %c0_52 = arith.constant 0 : index
    %123 = vector.load %arg8[%c0_51, %c0_52] : memref<8x32xf32, #tpu.memory_space<vmem>>, vector<8x32xf32>
    tpu.vector_store %arg8[%c0_51, %c0_52], %120 {strides = array<i32>} : memref<8x32xf32, #tpu.memory_space<vmem>>, vector<8x32xf32>,
    %c0_53 = arith.constant 0 : index
    %c0_54 = arith.constant 0 : index
    %124 = vector.load %arg7[%c0_53, %c0_54] : memref<8x32xf32, #tpu.memory_space<vmem>>, vector<8x32xf32>
    tpu.vector_store %arg7[%c0_53, %c0_54], %122 {strides = array<i32>} : memref<8x32xf32, #tpu.memory_space<vmem>>, vector<8x32xf32>,
    %125 = arith.index_cast %c2_i32 : i32 to index
    %c0_55 = arith.constant 0 : index
    %c0_56 = arith.constant 0 : index
    %126 = vector.load %arg6[%125, %c0_55, %c0_56] : memref<8x8x32xf32, #tpu.memory_space<vmem>>, vector<1x8x32xf32>
    %127 = vector.shape_cast %126 : vector<1x8x32xf32> to vector<8x32xf32>
    %128 = vector.shape_cast %122 : vector<8x32xf32> to vector<1x8x32xf32>
    tpu.vector_store %arg6[%125, %c0_55, %c0_56], %128 {strides = array<i32>} : memref<8x8x32xf32, #tpu.memory_space<vmem>>, vector<1x8x32xf32>,
    %c3_i32 = arith.constant 3 : i32
    %129 = arith.index_cast %c3_i32 : i32 to index
    %c0_57 = arith.constant 0 : index
    %c0_58 = arith.constant 0 : index
    %130 = vector.load %arg2[%129, %c0_57, %c0_58] : memref<8x8x16xf32, #tpu.memory_space<vmem>>, vector<1x8x16xf32>
    %131 = vector.shape_cast %130 : vector<1x8x16xf32> to vector<8x16xf32>
    %c0_59 = arith.constant 0 : index
    %c0_60 = arith.constant 0 : index
    %132 = vector.load %arg7[%c0_59, %c0_60] : memref<8x32xf32, #tpu.memory_space<vmem>>, vector<8x32xf32>
    %cst_61 = arith.constant dense<0.000000e+00> : vector<8x128xf32>
    %133 = tpu.matmul %131, %3, %cst_61 {dimension_numbers = #tpu.dot_dimension_numbers<[1], [0], [0], [1], [0, 0, 1, 1], [], []>} : vector<8x16xf32>, vector<16x128xf32>, vector<8x128xf32> -> vector<8x128xf32>
    %cst_62 = arith.constant dense<0.000000e+00> : vector<8x128xf32>
    %134 = tpu.matmul %132, %4, %cst_62 {dimension_numbers = #tpu.dot_dimension_numbers<[1], [0], [0], [1], [0, 0, 1, 1], [], []>} : vector<8x32xf32>, vector<32x128xf32>, vector<8x128xf32> -> vector<8x128xf32>
    %135 = arith.addf %133, %134 : vector<8x128xf32>
    %136 = vector.broadcast %5 : vector<1x128xf32> to vector<8x128xf32>
    %137 = arith.addf %135, %136 : vector<8x128xf32>
    %138 = vector.extract_strided_slice %137 {offsets = [0, 0], sizes = [8, 32], strides = [1, 1]} : vector<8x128xf32> to vector<8x32xf32>
    %139 = arith.negf %138 : vector<8x32xf32>
    %140 = math.exp %139 : vector<8x32xf32>
    %cst_63 = arith.constant 1.000000e+00 : f32
    %141 = vector.broadcast %cst_63 : f32 to vector<8x32xf32>
    %142 = arith.addf %141, %140 : vector<8x32xf32>
    %143 = arith.divf %141, %142 : vector<8x32xf32>
    %144 = vector.extract_strided_slice %137 {offsets = [0, 32], sizes = [8, 32], strides = [1, 1]} : vector<8x128xf32> to vector<8x32xf32>
    %145 = arith.negf %144 : vector<8x32xf32>
    %146 = math.exp %145 : vector<8x32xf32>
    %cst_64 = arith.constant 1.000000e+00 : f32
    %147 = vector.broadcast %cst_64 : f32 to vector<8x32xf32>
    %148 = arith.addf %147, %146 : vector<8x32xf32>
    %149 = arith.divf %147, %148 : vector<8x32xf32>
    %150 = vector.extract_strided_slice %137 {offsets = [0, 64], sizes = [8, 32], strides = [1, 1]} : vector<8x128xf32> to vector<8x32xf32>
    %151 = math.tanh %150 : vector<8x32xf32>
    %152 = vector.extract_strided_slice %137 {offsets = [0, 96], sizes = [8, 32], strides = [1, 1]} : vector<8x128xf32> to vector<8x32xf32>
    %153 = arith.negf %152 : vector<8x32xf32>
    %154 = math.exp %153 : vector<8x32xf32>
    %cst_65 = arith.constant 1.000000e+00 : f32
    %155 = vector.broadcast %cst_65 : f32 to vector<8x32xf32>
    %156 = arith.addf %155, %154 : vector<8x32xf32>
    %157 = arith.divf %155, %156 : vector<8x32xf32>
    %c0_66 = arith.constant 0 : index
    %c0_67 = arith.constant 0 : index
    %158 = vector.load %arg8[%c0_66, %c0_67] : memref<8x32xf32, #tpu.memory_space<vmem>>, vector<8x32xf32>
    %159 = arith.mulf %149, %158 : vector<8x32xf32>
    %160 = arith.mulf %143, %151 : vector<8x32xf32>
    %161 = arith.addf %159, %160 : vector<8x32xf32>
    %162 = math.tanh %161 : vector<8x32xf32>
    %163 = arith.mulf %157, %162 : vector<8x32xf32>
    %c0_68 = arith.constant 0 : index
    %c0_69 = arith.constant 0 : index
    %164 = vector.load %arg8[%c0_68, %c0_69] : memref<8x32xf32, #tpu.memory_space<vmem>>, vector<8x32xf32>
    tpu.vector_store %arg8[%c0_68, %c0_69], %161 {strides = array<i32>} : memref<8x32xf32, #tpu.memory_space<vmem>>, vector<8x32xf32>,
    %c0_70 = arith.constant 0 : index
    %c0_71 = arith.constant 0 : index
    %165 = vector.load %arg7[%c0_70, %c0_71] : memref<8x32xf32, #tpu.memory_space<vmem>>, vector<8x32xf32>
    tpu.vector_store %arg7[%c0_70, %c0_71], %163 {strides = array<i32>} : memref<8x32xf32, #tpu.memory_space<vmem>>, vector<8x32xf32>,
    %166 = arith.index_cast %c3_i32 : i32 to index
    %c0_72 = arith.constant 0 : index
    %c0_73 = arith.constant 0 : index
    %167 = vector.load %arg6[%166, %c0_72, %c0_73] : memref<8x8x32xf32, #tpu.memory_space<vmem>>, vector<1x8x32xf32>
    %168 = vector.shape_cast %167 : vector<1x8x32xf32> to vector<8x32xf32>
    %169 = vector.shape_cast %163 : vector<8x32xf32> to vector<1x8x32xf32>
    tpu.vector_store %arg6[%166, %c0_72, %c0_73], %169 {strides = array<i32>} : memref<8x8x32xf32, #tpu.memory_space<vmem>>, vector<1x8x32xf32>,
    %c4_i32 = arith.constant 4 : i32
    %170 = arith.index_cast %c4_i32 : i32 to index
    %c0_74 = arith.constant 0 : index
    %c0_75 = arith.constant 0 : index
    %171 = vector.load %arg2[%170, %c0_74, %c0_75] : memref<8x8x16xf32, #tpu.memory_space<vmem>>, vector<1x8x16xf32>
    %172 = vector.shape_cast %171 : vector<1x8x16xf32> to vector<8x16xf32>
    %c0_76 = arith.constant 0 : index
    %c0_77 = arith.constant 0 : index
    %173 = vector.load %arg7[%c0_76, %c0_77] : memref<8x32xf32, #tpu.memory_space<vmem>>, vector<8x32xf32>
    %cst_78 = arith.constant dense<0.000000e+00> : vector<8x128xf32>
    %174 = tpu.matmul %172, %3, %cst_78 {dimension_numbers = #tpu.dot_dimension_numbers<[1], [0], [0], [1], [0, 0, 1, 1], [], []>} : vector<8x16xf32>, vector<16x128xf32>, vector<8x128xf32> -> vector<8x128xf32>
    %cst_79 = arith.constant dense<0.000000e+00> : vector<8x128xf32>
    %175 = tpu.matmul %173, %4, %cst_79 {dimension_numbers = #tpu.dot_dimension_numbers<[1], [0], [0], [1], [0, 0, 1, 1], [], []>} : vector<8x32xf32>, vector<32x128xf32>, vector<8x128xf32> -> vector<8x128xf32>
    %176 = arith.addf %174, %175 : vector<8x128xf32>
    %177 = vector.broadcast %5 : vector<1x128xf32> to vector<8x128xf32>
    %178 = arith.addf %176, %177 : vector<8x128xf32>
    %179 = vector.extract_strided_slice %178 {offsets = [0, 0], sizes = [8, 32], strides = [1, 1]} : vector<8x128xf32> to vector<8x32xf32>
    %180 = arith.negf %179 : vector<8x32xf32>
    %181 = math.exp %180 : vector<8x32xf32>
    %cst_80 = arith.constant 1.000000e+00 : f32
    %182 = vector.broadcast %cst_80 : f32 to vector<8x32xf32>
    %183 = arith.addf %182, %181 : vector<8x32xf32>
    %184 = arith.divf %182, %183 : vector<8x32xf32>
    %185 = vector.extract_strided_slice %178 {offsets = [0, 32], sizes = [8, 32], strides = [1, 1]} : vector<8x128xf32> to vector<8x32xf32>
    %186 = arith.negf %185 : vector<8x32xf32>
    %187 = math.exp %186 : vector<8x32xf32>
    %cst_81 = arith.constant 1.000000e+00 : f32
    %188 = vector.broadcast %cst_81 : f32 to vector<8x32xf32>
    %189 = arith.addf %188, %187 : vector<8x32xf32>
    %190 = arith.divf %188, %189 : vector<8x32xf32>
    %191 = vector.extract_strided_slice %178 {offsets = [0, 64], sizes = [8, 32], strides = [1, 1]} : vector<8x128xf32> to vector<8x32xf32>
    %192 = math.tanh %191 : vector<8x32xf32>
    %193 = vector.extract_strided_slice %178 {offsets = [0, 96], sizes = [8, 32], strides = [1, 1]} : vector<8x128xf32> to vector<8x32xf32>
    %194 = arith.negf %193 : vector<8x32xf32>
    %195 = math.exp %194 : vector<8x32xf32>
    %cst_82 = arith.constant 1.000000e+00 : f32
    %196 = vector.broadcast %cst_82 : f32 to vector<8x32xf32>
    %197 = arith.addf %196, %195 : vector<8x32xf32>
    %198 = arith.divf %196, %197 : vector<8x32xf32>
    %c0_83 = arith.constant 0 : index
    %c0_84 = arith.constant 0 : index
    %199 = vector.load %arg8[%c0_83, %c0_84] : memref<8x32xf32, #tpu.memory_space<vmem>>, vector<8x32xf32>
    %200 = arith.mulf %190, %199 : vector<8x32xf32>
    %201 = arith.mulf %184, %192 : vector<8x32xf32>
    %202 = arith.addf %200, %201 : vector<8x32xf32>
    %203 = math.tanh %202 : vector<8x32xf32>
    %204 = arith.mulf %198, %203 : vector<8x32xf32>
    %c0_85 = arith.constant 0 : index
    %c0_86 = arith.constant 0 : index
    %205 = vector.load %arg8[%c0_85, %c0_86] : memref<8x32xf32, #tpu.memory_space<vmem>>, vector<8x32xf32>
    tpu.vector_store %arg8[%c0_85, %c0_86], %202 {strides = array<i32>} : memref<8x32xf32, #tpu.memory_space<vmem>>, vector<8x32xf32>,
    %c0_87 = arith.constant 0 : index
    %c0_88 = arith.constant 0 : index
    %206 = vector.load %arg7[%c0_87, %c0_88] : memref<8x32xf32, #tpu.memory_space<vmem>>, vector<8x32xf32>
    tpu.vector_store %arg7[%c0_87, %c0_88], %204 {strides = array<i32>} : memref<8x32xf32, #tpu.memory_space<vmem>>, vector<8x32xf32>,
    %207 = arith.index_cast %c4_i32 : i32 to index
    %c0_89 = arith.constant 0 : index
    %c0_90 = arith.constant 0 : index
    %208 = vector.load %arg6[%207, %c0_89, %c0_90] : memref<8x8x32xf32, #tpu.memory_space<vmem>>, vector<1x8x32xf32>
    %209 = vector.shape_cast %208 : vector<1x8x32xf32> to vector<8x32xf32>
    %210 = vector.shape_cast %204 : vector<8x32xf32> to vector<1x8x32xf32>
    tpu.vector_store %arg6[%207, %c0_89, %c0_90], %210 {strides = array<i32>} : memref<8x8x32xf32, #tpu.memory_space<vmem>>, vector<1x8x32xf32>,
    %c5_i32 = arith.constant 5 : i32
    %211 = arith.index_cast %c5_i32 : i32 to index
    %c0_91 = arith.constant 0 : index
    %c0_92 = arith.constant 0 : index
    %212 = vector.load %arg2[%211, %c0_91, %c0_92] : memref<8x8x16xf32, #tpu.memory_space<vmem>>, vector<1x8x16xf32>
    %213 = vector.shape_cast %212 : vector<1x8x16xf32> to vector<8x16xf32>
    %c0_93 = arith.constant 0 : index
    %c0_94 = arith.constant 0 : index
    %214 = vector.load %arg7[%c0_93, %c0_94] : memref<8x32xf32, #tpu.memory_space<vmem>>, vector<8x32xf32>
    %cst_95 = arith.constant dense<0.000000e+00> : vector<8x128xf32>
    %215 = tpu.matmul %213, %3, %cst_95 {dimension_numbers = #tpu.dot_dimension_numbers<[1], [0], [0], [1], [0, 0, 1, 1], [], []>} : vector<8x16xf32>, vector<16x128xf32>, vector<8x128xf32> -> vector<8x128xf32>
    %cst_96 = arith.constant dense<0.000000e+00> : vector<8x128xf32>
    %216 = tpu.matmul %214, %4, %cst_96 {dimension_numbers = #tpu.dot_dimension_numbers<[1], [0], [0], [1], [0, 0, 1, 1], [], []>} : vector<8x32xf32>, vector<32x128xf32>, vector<8x128xf32> -> vector<8x128xf32>
    %217 = arith.addf %215, %216 : vector<8x128xf32>
    %218 = vector.broadcast %5 : vector<1x128xf32> to vector<8x128xf32>
    %219 = arith.addf %217, %218 : vector<8x128xf32>
    %220 = vector.extract_strided_slice %219 {offsets = [0, 0], sizes = [8, 32], strides = [1, 1]} : vector<8x128xf32> to vector<8x32xf32>
    %221 = arith.negf %220 : vector<8x32xf32>
    %222 = math.exp %221 : vector<8x32xf32>
    %cst_97 = arith.constant 1.000000e+00 : f32
    %223 = vector.broadcast %cst_97 : f32 to vector<8x32xf32>
    %224 = arith.addf %223, %222 : vector<8x32xf32>
    %225 = arith.divf %223, %224 : vector<8x32xf32>
    %226 = vector.extract_strided_slice %219 {offsets = [0, 32], sizes = [8, 32], strides = [1, 1]} : vector<8x128xf32> to vector<8x32xf32>
    %227 = arith.negf %226 : vector<8x32xf32>
    %228 = math.exp %227 : vector<8x32xf32>
    %cst_98 = arith.constant 1.000000e+00 : f32
    %229 = vector.broadcast %cst_98 : f32 to vector<8x32xf32>
    %230 = arith.addf %229, %228 : vector<8x32xf32>
    %231 = arith.divf %229, %230 : vector<8x32xf32>
    %232 = vector.extract_strided_slice %219 {offsets = [0, 64], sizes = [8, 32], strides = [1, 1]} : vector<8x128xf32> to vector<8x32xf32>
    %233 = math.tanh %232 : vector<8x32xf32>
    %234 = vector.extract_strided_slice %219 {offsets = [0, 96], sizes = [8, 32], strides = [1, 1]} : vector<8x128xf32> to vector<8x32xf32>
    %235 = arith.negf %234 : vector<8x32xf32>
    %236 = math.exp %235 : vector<8x32xf32>
    %cst_99 = arith.constant 1.000000e+00 : f32
    %237 = vector.broadcast %cst_99 : f32 to vector<8x32xf32>
    %238 = arith.addf %237, %236 : vector<8x32xf32>
    %239 = arith.divf %237, %238 : vector<8x32xf32>
    %c0_100 = arith.constant 0 : index
    %c0_101 = arith.constant 0 : index
    %240 = vector.load %arg8[%c0_100, %c0_101] : memref<8x32xf32, #tpu.memory_space<vmem>>, vector<8x32xf32>
    %241 = arith.mulf %231, %240 : vector<8x32xf32>
    %242 = arith.mulf %225, %233 : vector<8x32xf32>
    %243 = arith.addf %241, %242 : vector<8x32xf32>
    %244 = math.tanh %243 : vector<8x32xf32>
    %245 = arith.mulf %239, %244 : vector<8x32xf32>
    %c0_102 = arith.constant 0 : index
    %c0_103 = arith.constant 0 : index
    %246 = vector.load %arg8[%c0_102, %c0_103] : memref<8x32xf32, #tpu.memory_space<vmem>>, vector<8x32xf32>
    tpu.vector_store %arg8[%c0_102, %c0_103], %243 {strides = array<i32>} : memref<8x32xf32, #tpu.memory_space<vmem>>, vector<8x32xf32>,
    %c0_104 = arith.constant 0 : index
    %c0_105 = arith.constant 0 : index
    %247 = vector.load %arg7[%c0_104, %c0_105] : memref<8x32xf32, #tpu.memory_space<vmem>>, vector<8x32xf32>
    tpu.vector_store %arg7[%c0_104, %c0_105], %245 {strides = array<i32>} : memref<8x32xf32, #tpu.memory_space<vmem>>, vector<8x32xf32>,
    %248 = arith.index_cast %c5_i32 : i32 to index
    %c0_106 = arith.constant 0 : index
    %c0_107 = arith.constant 0 : index
    %249 = vector.load %arg6[%248, %c0_106, %c0_107] : memref<8x8x32xf32, #tpu.memory_space<vmem>>, vector<1x8x32xf32>
    %250 = vector.shape_cast %249 : vector<1x8x32xf32> to vector<8x32xf32>
    %251 = vector.shape_cast %245 : vector<8x32xf32> to vector<1x8x32xf32>
    tpu.vector_store %arg6[%248, %c0_106, %c0_107], %251 {strides = array<i32>} : memref<8x8x32xf32, #tpu.memory_space<vmem>>, vector<1x8x32xf32>,
    %c6_i32 = arith.constant 6 : i32
    %252 = arith.index_cast %c6_i32 : i32 to index
    %c0_108 = arith.constant 0 : index
    %c0_109 = arith.constant 0 : index
    %253 = vector.load %arg2[%252, %c0_108, %c0_109] : memref<8x8x16xf32, #tpu.memory_space<vmem>>, vector<1x8x16xf32>
    %254 = vector.shape_cast %253 : vector<1x8x16xf32> to vector<8x16xf32>
    %c0_110 = arith.constant 0 : index
    %c0_111 = arith.constant 0 : index
    %255 = vector.load %arg7[%c0_110, %c0_111] : memref<8x32xf32, #tpu.memory_space<vmem>>, vector<8x32xf32>
    %cst_112 = arith.constant dense<0.000000e+00> : vector<8x128xf32>
    %256 = tpu.matmul %254, %3, %cst_112 {dimension_numbers = #tpu.dot_dimension_numbers<[1], [0], [0], [1], [0, 0, 1, 1], [], []>} : vector<8x16xf32>, vector<16x128xf32>, vector<8x128xf32> -> vector<8x128xf32>
    %cst_113 = arith.constant dense<0.000000e+00> : vector<8x128xf32>
    %257 = tpu.matmul %255, %4, %cst_113 {dimension_numbers = #tpu.dot_dimension_numbers<[1], [0], [0], [1], [0, 0, 1, 1], [], []>} : vector<8x32xf32>, vector<32x128xf32>, vector<8x128xf32> -> vector<8x128xf32>
    %258 = arith.addf %256, %257 : vector<8x128xf32>
    %259 = vector.broadcast %5 : vector<1x128xf32> to vector<8x128xf32>
    %260 = arith.addf %258, %259 : vector<8x128xf32>
    %261 = vector.extract_strided_slice %260 {offsets = [0, 0], sizes = [8, 32], strides = [1, 1]} : vector<8x128xf32> to vector<8x32xf32>
    %262 = arith.negf %261 : vector<8x32xf32>
    %263 = math.exp %262 : vector<8x32xf32>
    %cst_114 = arith.constant 1.000000e+00 : f32
    %264 = vector.broadcast %cst_114 : f32 to vector<8x32xf32>
    %265 = arith.addf %264, %263 : vector<8x32xf32>
    %266 = arith.divf %264, %265 : vector<8x32xf32>
    %267 = vector.extract_strided_slice %260 {offsets = [0, 32], sizes = [8, 32], strides = [1, 1]} : vector<8x128xf32> to vector<8x32xf32>
    %268 = arith.negf %267 : vector<8x32xf32>
    %269 = math.exp %268 : vector<8x32xf32>
    %cst_115 = arith.constant 1.000000e+00 : f32
    %270 = vector.broadcast %cst_115 : f32 to vector<8x32xf32>
    %271 = arith.addf %270, %269 : vector<8x32xf32>
    %272 = arith.divf %270, %271 : vector<8x32xf32>
    %273 = vector.extract_strided_slice %260 {offsets = [0, 64], sizes = [8, 32], strides = [1, 1]} : vector<8x128xf32> to vector<8x32xf32>
    %274 = math.tanh %273 : vector<8x32xf32>
    %275 = vector.extract_strided_slice %260 {offsets = [0, 96], sizes = [8, 32], strides = [1, 1]} : vector<8x128xf32> to vector<8x32xf32>
    %276 = arith.negf %275 : vector<8x32xf32>
    %277 = math.exp %276 : vector<8x32xf32>
    %cst_116 = arith.constant 1.000000e+00 : f32
    %278 = vector.broadcast %cst_116 : f32 to vector<8x32xf32>
    %279 = arith.addf %278, %277 : vector<8x32xf32>
    %280 = arith.divf %278, %279 : vector<8x32xf32>
    %c0_117 = arith.constant 0 : index
    %c0_118 = arith.constant 0 : index
    %281 = vector.load %arg8[%c0_117, %c0_118] : memref<8x32xf32, #tpu.memory_space<vmem>>, vector<8x32xf32>
    %282 = arith.mulf %272, %281 : vector<8x32xf32>
    %283 = arith.mulf %266, %274 : vector<8x32xf32>
    %284 = arith.addf %282, %283 : vector<8x32xf32>
    %285 = math.tanh %284 : vector<8x32xf32>
    %286 = arith.mulf %280, %285 : vector<8x32xf32>
    %c0_119 = arith.constant 0 : index
    %c0_120 = arith.constant 0 : index
    %287 = vector.load %arg8[%c0_119, %c0_120] : memref<8x32xf32, #tpu.memory_space<vmem>>, vector<8x32xf32>
    tpu.vector_store %arg8[%c0_119, %c0_120], %284 {strides = array<i32>} : memref<8x32xf32, #tpu.memory_space<vmem>>, vector<8x32xf32>,
    %c0_121 = arith.constant 0 : index
    %c0_122 = arith.constant 0 : index
    %288 = vector.load %arg7[%c0_121, %c0_122] : memref<8x32xf32, #tpu.memory_space<vmem>>, vector<8x32xf32>
    tpu.vector_store %arg7[%c0_121, %c0_122], %286 {strides = array<i32>} : memref<8x32xf32, #tpu.memory_space<vmem>>, vector<8x32xf32>,
    %289 = arith.index_cast %c6_i32 : i32 to index
    %c0_123 = arith.constant 0 : index
    %c0_124 = arith.constant 0 : index
    %290 = vector.load %arg6[%289, %c0_123, %c0_124] : memref<8x8x32xf32, #tpu.memory_space<vmem>>, vector<1x8x32xf32>
    %291 = vector.shape_cast %290 : vector<1x8x32xf32> to vector<8x32xf32>
    %292 = vector.shape_cast %286 : vector<8x32xf32> to vector<1x8x32xf32>
    tpu.vector_store %arg6[%289, %c0_123, %c0_124], %292 {strides = array<i32>} : memref<8x8x32xf32, #tpu.memory_space<vmem>>, vector<1x8x32xf32>,
    %c7_i32 = arith.constant 7 : i32
    %293 = arith.index_cast %c7_i32 : i32 to index
    %c0_125 = arith.constant 0 : index
    %c0_126 = arith.constant 0 : index
    %294 = vector.load %arg2[%293, %c0_125, %c0_126] : memref<8x8x16xf32, #tpu.memory_space<vmem>>, vector<1x8x16xf32>
    %295 = vector.shape_cast %294 : vector<1x8x16xf32> to vector<8x16xf32>
    %c0_127 = arith.constant 0 : index
    %c0_128 = arith.constant 0 : index
    %296 = vector.load %arg7[%c0_127, %c0_128] : memref<8x32xf32, #tpu.memory_space<vmem>>, vector<8x32xf32>
    %cst_129 = arith.constant dense<0.000000e+00> : vector<8x128xf32>
    %297 = tpu.matmul %295, %3, %cst_129 {dimension_numbers = #tpu.dot_dimension_numbers<[1], [0], [0], [1], [0, 0, 1, 1], [], []>} : vector<8x16xf32>, vector<16x128xf32>, vector<8x128xf32> -> vector<8x128xf32>
    %cst_130 = arith.constant dense<0.000000e+00> : vector<8x128xf32>
    %298 = tpu.matmul %296, %4, %cst_130 {dimension_numbers = #tpu.dot_dimension_numbers<[1], [0], [0], [1], [0, 0, 1, 1], [], []>} : vector<8x32xf32>, vector<32x128xf32>, vector<8x128xf32> -> vector<8x128xf32>
    %299 = arith.addf %297, %298 : vector<8x128xf32>
    %300 = vector.broadcast %5 : vector<1x128xf32> to vector<8x128xf32>
    %301 = arith.addf %299, %300 : vector<8x128xf32>
    %302 = vector.extract_strided_slice %301 {offsets = [0, 0], sizes = [8, 32], strides = [1, 1]} : vector<8x128xf32> to vector<8x32xf32>
    %303 = arith.negf %302 : vector<8x32xf32>
    %304 = math.exp %303 : vector<8x32xf32>
    %cst_131 = arith.constant 1.000000e+00 : f32
    %305 = vector.broadcast %cst_131 : f32 to vector<8x32xf32>
    %306 = arith.addf %305, %304 : vector<8x32xf32>
    %307 = arith.divf %305, %306 : vector<8x32xf32>
    %308 = vector.extract_strided_slice %301 {offsets = [0, 32], sizes = [8, 32], strides = [1, 1]} : vector<8x128xf32> to vector<8x32xf32>
    %309 = arith.negf %308 : vector<8x32xf32>
    %310 = math.exp %309 : vector<8x32xf32>
    %cst_132 = arith.constant 1.000000e+00 : f32
    %311 = vector.broadcast %cst_132 : f32 to vector<8x32xf32>
    %312 = arith.addf %311, %310 : vector<8x32xf32>
    %313 = arith.divf %311, %312 : vector<8x32xf32>
    %314 = vector.extract_strided_slice %301 {offsets = [0, 64], sizes = [8, 32], strides = [1, 1]} : vector<8x128xf32> to vector<8x32xf32>
    %315 = math.tanh %314 : vector<8x32xf32>
    %316 = vector.extract_strided_slice %301 {offsets = [0, 96], sizes = [8, 32], strides = [1, 1]} : vector<8x128xf32> to vector<8x32xf32>
    %317 = arith.negf %316 : vector<8x32xf32>
    %318 = math.exp %317 : vector<8x32xf32>
    %cst_133 = arith.constant 1.000000e+00 : f32
    %319 = vector.broadcast %cst_133 : f32 to vector<8x32xf32>
    %320 = arith.addf %319, %318 : vector<8x32xf32>
    %321 = arith.divf %319, %320 : vector<8x32xf32>
    %c0_134 = arith.constant 0 : index
    %c0_135 = arith.constant 0 : index
    %322 = vector.load %arg8[%c0_134, %c0_135] : memref<8x32xf32, #tpu.memory_space<vmem>>, vector<8x32xf32>
    %323 = arith.mulf %313, %322 : vector<8x32xf32>
    %324 = arith.mulf %307, %315 : vector<8x32xf32>
    %325 = arith.addf %323, %324 : vector<8x32xf32>
    %326 = math.tanh %325 : vector<8x32xf32>
    %327 = arith.mulf %321, %326 : vector<8x32xf32>
    %c0_136 = arith.constant 0 : index
    %c0_137 = arith.constant 0 : index
    %328 = vector.load %arg8[%c0_136, %c0_137] : memref<8x32xf32, #tpu.memory_space<vmem>>, vector<8x32xf32>
    tpu.vector_store %arg8[%c0_136, %c0_137], %325 {strides = array<i32>} : memref<8x32xf32, #tpu.memory_space<vmem>>, vector<8x32xf32>,
    %c0_138 = arith.constant 0 : index
    %c0_139 = arith.constant 0 : index
    %329 = vector.load %arg7[%c0_138, %c0_139] : memref<8x32xf32, #tpu.memory_space<vmem>>, vector<8x32xf32>
    tpu.vector_store %arg7[%c0_138, %c0_139], %327 {strides = array<i32>} : memref<8x32xf32, #tpu.memory_space<vmem>>, vector<8x32xf32>,
    %330 = arith.index_cast %c7_i32 : i32 to index
    %c0_140 = arith.constant 0 : index
    %c0_141 = arith.constant 0 : index
    %331 = vector.load %arg6[%330, %c0_140, %c0_141] : memref<8x8x32xf32, #tpu.memory_space<vmem>>, vector<1x8x32xf32>
    %332 = vector.shape_cast %331 : vector<1x8x32xf32> to vector<8x32xf32>
    %333 = vector.shape_cast %327 : vector<8x32xf32> to vector<1x8x32xf32>
    tpu.vector_store %arg6[%330, %c0_140, %c0_141], %333 {strides = array<i32>} : memref<8x8x32xf32, #tpu.memory_space<vmem>>, vector<1x8x32xf32>,
    %c8_i32 = arith.constant 8 : i32
    return
  }
  func.func @transform_0(%arg0: i32, %arg1: i32) -> (i32, i32, i32) {
    %c0_i32 = arith.constant 0 : i32
    %c0_i32_0 = arith.constant 0 : i32
    return %arg1, %arg0, %c0_i32 : i32, i32, i32
  }
  func.func @transform_1(%arg0: i32, %arg1: i32) -> (i32, i32) {
    %c0_i32 = arith.constant 0 : i32
    %c0_i32_0 = arith.constant 0 : i32
    %c0_i32_1 = arith.constant 0 : i32
    return %c0_i32, %c0_i32_0 : i32, i32
  }
  func.func @transform_2(%arg0: i32, %arg1: i32) -> (i32, i32) {
    %c0_i32 = arith.constant 0 : i32
    %c0_i32_0 = arith.constant 0 : i32
    %c0_i32_1 = arith.constant 0 : i32
    return %c0_i32, %c0_i32_0 : i32, i32
  }
  func.func @transform_3(%arg0: i32, %arg1: i32) -> (i32, i32) {
    %c0_i32 = arith.constant 0 : i32
    %c0_i32_0 = arith.constant 0 : i32
    %c0_i32_1 = arith.constant 0 : i32
    return %c0_i32, %c0_i32_0 : i32, i32
  }
  func.func @transform_4(%arg0: i32, %arg1: i32) -> (i32, i32, i32) {
    %c0_i32 = arith.constant 0 : i32
    %c0_i32_0 = arith.constant 0 : i32
    return %arg1, %arg0, %c0_i32 : i32, i32, i32
  }
}

</mosaic_0001>

<bundles_post_ra>
// kernel: tpu_custom_call.1
= control target key start
LH: loop header
LB: loop body
LE: loop exit
PB: predicated region body
PF: predicated region fallthrough
CT: control target
= control target key end

     0   :  { %9 = vsyncpa [#allocation5], 0  ;;  %s2324_s0 = inlined_call_operand.hbm [shape: f32[8,8,16], index: 0, kind: input, shape index: {}]   ;;  %s2325_s1 = inlined_call_operand.hbm [shape: f32[16,128], index: 1, kind: input, shape index: {}]   ;;  %s2326_s2 = inlined_call_operand.hbm [shape: f32[32,128], index: 2, kind: input, shape index: {}]   ;;  %s2327_s3 = inlined_call_operand.vmem [shape: f32[1,128], index: 3, kind: input, shape index: {}]   ;;  %s2328_s4 = inlined_call_operand.hbm [shape: f32[8,8,32], index: 4, kind: output, shape index: {}]  }
   0x1   :  { %10 = vsyncpa [#allocation8], 0 }
   0x2   :  { %11 = vsyncpa [#allocation6], 0  ;;  %s2019_s15 = smov [#allocation7]   ;;  %s2020_s17 = smov [#allocation4]  }
   0x3   :  { %s29_s16 = sshll.u32 %s2019_s15, 4  ;;  %s17_s18 = sshll.u32 %s2020_s17, 4  ;;  %s30_s16 = int_to_ptr.vmem [resolvable:$true] %s29_s16  ;;  %s18_s18 = int_to_ptr.vmem [resolvable:$true] %s17_s18 }
   0x4   :  { %s1941_s19 = scalar_lea.vmem %s30_s16, 256  ;;  %p1946_p1 = scmp.lt.s32.totalorder %s30_s16, %s30_s16 }
   0x5   :  { %p1942_p0 = scmp.ne.s32.totalorder %s30_s16, %s1941_s19  ;;  %p1947_p2 = scmp.lt.s32.totalorder %s1941_s19, %s1941_s19 }
   0x7   :  { %p1948_p3 = por %p1947_p2, %p1946_p1 }
   0x9   :  { %p1949_p4 = pnand %p1948_p3, %p1942_p0 }
   0xb   :  { %1952 = shalt.err (!%p1949_p4)
}
   0xc   :  { %s2021_s20 = smov 128   ;;  %s2022_s21 = smov 8  }
   0xd   :  { %35 = dma.hbm_to_vmem [thread:$0]  %s2325_s1, 256, %s30_s16, [#allocation8], %s2021_s20, %s2021_s20, %s2022_s21  }
   0xe   :  { %s1961_s24 = scalar_lea.vmem %s18_s18, 1024  ;;  %p1966_p6 = scmp.lt.s32.totalorder %s18_s18, %s18_s18 }
   0xf   :  { %p1962_p5 = scmp.ne.s32.totalorder %s18_s18, %s1961_s24  ;;  %p1967_p7 = scmp.lt.s32.totalorder %s1961_s24, %s1961_s24 }
  0x11   :  { %p1968_p8 = por %p1967_p7, %p1966_p6 }
  0x13   :  { %p1969_p9 = pnand %p1968_p8, %p1962_p5 }
  0x15   :  { %1972 = shalt.err (!%p1969_p9)
}
  0x16   :  { %23 = dma.hbm_to_vmem [thread:$0]  %s2324_s0, 1024, %s18_s18, [#allocation5], %s2021_s20, %s2021_s20, %s2022_s21  }
  0x17   :  { %s2023_s27 = smov [#allocation9]  }
  0x18   :  { %s41_s28 = sshll.u32 %s2023_s27, 4  ;;  %s42_s28 = int_to_ptr.vmem [resolvable:$true] %s41_s28 }
  0x19   :  { %s1981_s29 = scalar_lea.vmem %s42_s28, 512  ;;  %p1986_p11 = scmp.lt.s32.totalorder %s42_s28, %s42_s28 }
  0x1a   :  { %p1982_p10 = scmp.ne.s32.totalorder %s42_s28, %s1981_s29  ;;  %p1987_p12 = scmp.lt.s32.totalorder %s1981_s29, %s1981_s29 }
  0x1c   :  { %p1988_p13 = por %p1987_p12, %p1986_p11 }
  0x1e   :  { %p1989_p0 = pnand %p1988_p13, %p1982_p10 }
  0x20   :  { %1992 = shalt.err (!%p1989_p0)
}
  0x21   :  { %47 = dma.hbm_to_vmem [thread:$0]  %s2326_s2, 512, %s42_s28, [#allocation8], %s2021_s20, %s2021_s20, %s2022_s21  }
  0x22   :  { %2013 = dma.done.wait [#allocation5], 1024  }
  0x23   :  { %2014 = vsyncadd [#allocation5], 4294966272 }
  0x24   :  { %2015 = dma.done.wait [#allocation8], 768  }
  0x25   :  { %2016 = vsyncadd [#allocation8], 4294966528  ;;  %vm63_vm0 = vcmask 261120   ;;  %v2024_v0 = vmov 0.0   ;;  %vm2025_vm1 = vmmov 0   ;;  %v2083_v1 = vld [vmem:[#allocation9 + $0x18] sm:$0xff] }
  0x26   :  { %1714 = vmatprep.subr.mxu0 %v2024_v0  ;;  %1725 = vmatprep.subr.mxu1 %v2024_v0  ;;  %64 = vst.msk [vmem:[#allocation2] sm:$0xff] %vm63_vm0, %v2024_v0  ;;  %65 = vst.msk [vmem:[#allocation3] sm:$0xff] %vm63_vm0, %v2024_v0  ;;  %v2085_v2 = vld [vmem:[#allocation9 + $0x10] sm:$0xff]  ;;  %v2087_v3 = vld [vmem:[#allocation7 + $0x8] sm:$0xff]  ;;  %vm149_vm2 = vcmask 130048   ;;  %s2026_s5 = smov 64  }
  0x27   :  { %1729 = vmatprep.mubr.msk.f32.mxu1 %vm2025_vm1, %v2024_v0  ;;  %1722 = vmatprep.mubr.msk.f32.mxu0 %vm2025_vm1, %v2024_v0  ;;  %v2091_v4 = vld [vmem:[#allocation7] sm:$0xff]  ;;  %v2095_v6 = vld [vmem:[#allocation9 + $0x8] sm:$0xff]  ;;  %v2101_v7 = vld [vmem:[#allocation9] sm:$0xff]  ;;  %s2027_s6 = smov 32   ;;  %s2029_s7 = smov [#allocation10]  }
  0x28   :  { %1715 = vmatpush3.msra.mxu0 %v2083_v1  ;;  %1726 = vmatpush3.msra.mxu1 %v2087_v3  ;;  %v73_v5 = vld [vmem:[#allocation4] sm:$0xff]  ;;  %v2128_v11 = vld [vmem:[%s2327_s3] ss:$0 sm:$0xff]  ;;  %s2028_s3 = smov 96   ;;  %v271_v29 = vld [vmem:[#allocation4 + $0x8] sm:$0xff]  ;;  %s1612_s8 = sshll.u32 %s2029_s7, 4  ;;  %s1613_s8 = int_to_ptr.vmem [resolvable:$true] %s1612_s8 }
  0x29   :  { %1716 = vmatprep.subr.mxu0 %v2024_v0  ;;  %1727 = vmatprep.subr.mxu1 %v2024_v0  ;;  %v462_v54 = vld [vmem:[#allocation4 + $0x10] sm:$0xff]  ;;  %s1993_s9 = scalar_lea.vmem %s1613_s8, 1024  ;;  %p1998_p2 = scmp.lt.s32.totalorder %s1613_s8, %s1613_s8 }
  0x2a   :  { %1717 = vmatpush3.msra.mxu0 %v2085_v2  ;;  %1728 = vmatpush3.msra.mxu1 %v2091_v4  ;;  %p1994_p1 = scmp.ne.s32.totalorder %s1613_s8, %s1993_s9  ;;  %p1999_p3 = scmp.lt.s32.totalorder %s1993_s9, %s1993_s9 }
  0x2b   :  { %1718 = vmatprep.subr.mxu0 %v2024_v0  ;;  %1730 = vmatmul.mubr.msk.f32.vlgmr.msra.gmra.mxu1 %vm149_vm2, %v73_v5 }
  0x2c   :  { %1719 = vmatpush3.msra.mxu0 %v2095_v6  ;;  %1732 = vmatprep.subr.mxu1 %v2024_v0  ;;  %p2000_p4 = por %p1999_p3, %p1998_p2 }
  0x2d   :  { %v74_v8 = vld [vmem:[#allocation2] sm:$0xff]  ;;  %1720 = vmatprep.subr.mxu0 %v2024_v0  ;;  %1733 = vmatpush3.msra.mxu1 %v2083_v1  ;;  %v237_v17 = vld [vmem:[#allocation3] sm:$0xff] }
  0x2e   :  { %1721 = vmatpush3.msra.mxu0 %v2101_v7  ;;  %1734 = vmatprep.subr.mxu1 %v2024_v0  ;;  %p2001_p5 = pnand %p2000_p4, %p1994_p1 }
  0x2f   :  { %1723 = vmatmul.mubr.msk.f32.vlgmr.msra.gmra.mxu0 %vm63_vm0, %v74_v8  ;;  %1743 = vmatprep.subr.mxu0 %v2024_v0 }
  0x30   :  { %1735 = vmatpush3.msra.mxu1 %v2085_v2  ;;  %1744 = vmatpush3.msra.mxu0 %v2087_v3 }
  0x31   :  { %1736 = vmatprep.subr.mxu1 %v2024_v0  ;;  %1745 = vmatprep.subr.mxu0 %v2024_v0 }
  0x32   :  { %1737 = vmatpush3.msra.mxu1 %v2095_v6  ;;  %1746 = vmatpush3.msra.mxu0 %v2091_v4 }
  0x33   :  { %1747 = vmatprep.mubr.msk.f32.mxu0 %vm2025_vm1, %v2024_v0  ;;  %1738 = vmatprep.subr.mxu1 %v2024_v0 }
  0x34   :  { %1739 = vmatpush3.msra.mxu1 %v2101_v7  ;;  %1740 = vmatprep.mubr.msk.f32.mxu1 %vm2025_vm1, %v2024_v0 }
  0x35   :  { %1750 = vmatprep.subr.mxu0 %v2024_v0  ;;  %1761 = vmatprep.subr.mxu1 %v2024_v0 }
  0x36   :  { %1748 = vmatmul.mubr.msk.f32.vlgmr.msra.gmra.mxu0 %vm149_vm2, %v271_v29 }
  0x37   :  { %1751 = vmatpush3.msra.mxu0 %v2083_v1  ;;  %1758 = vmatprep.mubr.msk.f32.mxu0 %vm2025_vm1, %v2024_v0 }
  0x38   :  { %1752 = vmatprep.subr.mxu0 %v2024_v0 }
  0x39   :  { %1753 = vmatpush3.msra.mxu0 %v2085_v2 }
  0x3a   :  { %1754 = vmatprep.subr.mxu0 %v2024_v0 }
  0x3b   :  { %1755 = vmatpush3.msra.mxu0 %v2095_v6 }
  0x3c   :  { %1756 = vmatprep.subr.mxu0 %v2024_v0 }
  0x3d   :  { %1757 = vmatpush3.msra.mxu0 %v2101_v7 }
  0x3e   :  { %1779 = vmatprep.subr.mxu0 %v2024_v0 }
  0xeb   :  { %v219_v9 = vpop.f32.mrf.mxu1 }
  0xed   :  { %v1731_v10 = vpop.f32.mrf.mxu1 }
  0xef   :  { %v145_v12 = vpop.f32.mrf.mxu0 }
  0xf0   :  { %v220_v13 = vadd.f32 %v219_v9, %v145_v12 }
  0xf1   :  { %v1724_v14 = vpop.f32.mrf.mxu0 }
  0xf2   :  { %v229_v15 = vadd.f32 %v2128_v11, %v220_v13 }
  0xf4   :  { %1869 = vtanh.f32 %v229_v15  ;;  %v1628_v18 = vmul.f32 -1.442695, %v229_v15 }
  0xf6   :  { %1871 = vpow2.f32 %v1628_v18  ;;  %v415_v36 = vpop.f32.mrf.mxu0 }
  0xf8   :  { %v1749_v37 = vpop.f32.mrf.mxu0 }
 0x101   :  { %v1870_v16 = vpop.eup %1869 }
 0x102   :  { %244 = vrot.lane.b32.xlu0 %v1870_v16, %s2026_s5 }
 0x103   :  { %v1872_v19 = vpop.eup %1871 }
 0x104   :  { %v233_v20 = vadd.f32 1.0, %v1872_v19 }
 0x106   :  { %239 = vrot.lane.b32.xlu0 %v237_v17, %s2027_s6  ;;  %1873 = vrcp.f32 %v233_v20 }
 0x113   :  { %v1874_v21 = vpop.eup %1873 }
 0x174   :  { %v245_v22 = vpop.permute.xlu0 %244 }
 0x175   :  { %v247_v23 = vmul.f32 %v1874_v21, %v245_v22 }
 0x177   :  { %249 = vrot.lane.b32.xlu1 %v247_v23, %s2027_s6  ;;  %v653_v23 = vld [vmem:[#allocation4 + $0x18] sm:$0xff] }
 0x178   :  { %v240_v24 = vpop.permute.xlu0 %239 }
 0x179   :  { %v242_v25 = vmul.f32 %v1874_v21, %v240_v24 }
 0x1e9   :  { %v250_v26 = vpop.permute.xlu1 %249 }
 0x1ea   :  { %v252_v27 = vadd.f32 %v250_v26, %v242_v25 }
 0x1ec   :  { %1875 = vtanh.f32 %v252_v27 }
 0x1f9   :  { %v1876_v28 = vpop.eup %1875 }
 0x1fa   :  { %255 = vrot.lane.b32.xlu1 %v1876_v28, %s2026_s5 }
 0x1fe   :  { %260 = vrot.lane.b32.xlu1 %v252_v27, %s2028_s3 }
 0x26c   :  { %v256_v30 = vpop.permute.xlu1 %255 }
 0x26d   :  { %v258_v31 = vmul.f32 %v1874_v21, %v256_v30 }
 0x26f   :  { %265 = vrot.lane.b32.xlu0 %v258_v31, %s2027_s6 }
 0x270   :  { %v261_v32 = vpop.permute.xlu1 %260 }
 0x271   :  { %263 = vst.msk [vmem:[#allocation3] sm:$0xff] %vm63_vm0, %v261_v32 }
 0x278   :  { %v427_v33 = vld [vmem:[#allocation3] sm:$0xff] }
 0x279   :  { %429 = vrot.lane.b32.xlu1 %v427_v33, %s2027_s6 }
 0x2e1   :  { %v266_v34 = vpop.permute.xlu0 %265 }
 0x2e2   :  { %268 = vst.msk [vmem:[#allocation2] sm:$0xff] %vm63_vm0, %v266_v34  ;;  %269 = vst.msk [vmem:[#allocation10] sm:$0xff] %vm63_vm0, %v266_v34 }
 0x2e9   :  { %v272_v35 = vld [vmem:[#allocation2] sm:$0xff] }
 0x2ea   :  { %1741 = vmatmul.mubr.msk.f32.vlgmr.msra.gmra.mxu1 %vm63_vm0, %v272_v35 }
 0x2eb   :  { %1762 = vmatpush3.msra.mxu1 %v2087_v3  ;;  %1765 = vmatprep.mubr.msk.f32.mxu1 %vm2025_vm1, %v2024_v0  ;;  %v430_v49 = vpop.permute.xlu1 %429 }
 0x2ec   :  { %1763 = vmatprep.subr.mxu1 %v2024_v0 }
 0x2ed   :  { %1764 = vmatpush3.msra.mxu1 %v2091_v4 }
 0x2ee   :  { %1768 = vmatprep.subr.mxu1 %v2024_v0  ;;  %1766 = vmatmul.mubr.msk.f32.vlgmr.msra.gmra.mxu1 %vm149_vm2, %v462_v54 }
 0x2ef   :  { %1769 = vmatpush3.msra.mxu1 %v2083_v1  ;;  %1776 = vmatprep.mubr.msk.f32.mxu1 %vm2025_vm1, %v2024_v0 }
 0x2f0   :  { %1770 = vmatprep.subr.mxu1 %v2024_v0 }
 0x2f1   :  { %1771 = vmatpush3.msra.mxu1 %v2085_v2 }
 0x2f2   :  { %1772 = vmatprep.subr.mxu1 %v2024_v0 }
 0x2f3   :  { %1773 = vmatpush3.msra.mxu1 %v2095_v6 }
 0x2f4   :  { %1774 = vmatprep.subr.mxu1 %v2024_v0 }
 0x2f5   :  { %1775 = vmatpush3.msra.mxu1 %v2101_v7 }
 0x2f6   :  { %1797 = vmatprep.subr.mxu1 %v2024_v0 }
 0x3aa   :  { %v342_v38 = vpop.f32.mrf.mxu1 }
 0x3ab   :  { %v416_v39 = vadd.f32 %v415_v36, %v342_v38 }
 0x3ac   :  { %v1742_v40 = vpop.f32.mrf.mxu1 }
 0x3ad   :  { %v419_v41 = vadd.f32 %v2128_v11, %v416_v39 }
 0x3ae   :  { %v606_v61 = vpop.f32.mrf.mxu1 }
 0x3af   :  { %1877 = vtanh.f32 %v419_v41  ;;  %v1631_v43 = vmul.f32 -1.442695, %v419_v41 }
 0x3b0   :  { %v1767_v62 = vpop.f32.mrf.mxu1 }
 0x3b1   :  { %1879 = vpow2.f32 %v1631_v43 }
 0x3bc   :  { %v1878_v42 = vpop.eup %1877 }
 0x3bd   :  { %434 = vrot.lane.b32.xlu0 %v1878_v42, %s2026_s5 }
 0x3be   :  { %v1880_v44 = vpop.eup %1879 }
 0x3bf   :  { %v423_v45 = vadd.f32 1.0, %v1880_v44 }
 0x3c1   :  { %1881 = vrcp.f32 %v423_v45 }
 0x3ce   :  { %v1882_v46 = vpop.eup %1881 }
 0x3cf   :  { %v432_v50 = vmul.f32 %v1882_v46, %v430_v49 }
 0x42f   :  { %v435_v47 = vpop.permute.xlu0 %434 }
 0x430   :  { %v437_v48 = vmul.f32 %v1882_v46, %v435_v47 }
 0x432   :  { %439 = vrot.lane.b32.xlu0 %v437_v48, %s2027_s6  ;;  %v844_v48 = vld [vmem:[#allocation4 + $0x20] sm:$0xff] }
 0x4a4   :  { %v440_v51 = vpop.permute.xlu0 %439 }
 0x4a5   :  { %v442_v52 = vadd.f32 %v440_v51, %v432_v50 }
 0x4a7   :  { %1883 = vtanh.f32 %v442_v52 }
 0x4b4   :  { %v1884_v53 = vpop.eup %1883 }
 0x4b5   :  { %445 = vrot.lane.b32.xlu1 %v1884_v53, %s2026_s5 }
 0x4b9   :  { %450 = vrot.lane.b32.xlu1 %v442_v52, %s2028_s3 }
 0x527   :  { %v446_v55 = vpop.permute.xlu1 %445 }
 0x528   :  { %v448_v56 = vmul.f32 %v1882_v46, %v446_v55 }
 0x52a   :  { %455 = vrot.lane.b32.xlu0 %v448_v56, %s2027_s6 }
 0x52b   :  { %v451_v57 = vpop.permute.xlu1 %450 }
 0x52c   :  { %453 = vst.msk [vmem:[#allocation3] sm:$0xff] %vm63_vm0, %v451_v57 }
 0x533   :  { %v618_v58 = vld [vmem:[#allocation3] sm:$0xff] }
 0x534   :  { %620 = vrot.lane.b32.xlu1 %v618_v58, %s2027_s6 }
 0x59c   :  { %v456_v59 = vpop.permute.xlu0 %455 }
 0x59d   :  { %458 = vst.msk [vmem:[#allocation2] sm:$0xff] %vm63_vm0, %v456_v59  ;;  %460 = vst.msk [vmem:[#allocation10 + $0x8] sm:$0xff] %vm63_vm0, %v456_v59 }
 0x5a4   :  { %v463_v60 = vld [vmem:[#allocation2] sm:$0xff] }
 0x5a5   :  { %1759 = vmatmul.mubr.msk.f32.vlgmr.msra.gmra.mxu0 %vm63_vm0, %v463_v60 }
 0x5a6   :  { %1780 = vmatpush3.msra.mxu0 %v2087_v3  ;;  %1783 = vmatprep.mubr.msk.f32.mxu0 %vm2025_vm1, %v2024_v0  ;;  %v621_v18 = vpop.permute.xlu1 %620 }
 0x5a7   :  { %1781 = vmatprep.subr.mxu0 %v2024_v0 }
 0x5a8   :  { %1782 = vmatpush3.msra.mxu0 %v2091_v4 }
 0x5a9   :  { %1786 = vmatprep.subr.mxu0 %v2024_v0  ;;  %1784 = vmatmul.mubr.msk.f32.vlgmr.msra.gmra.mxu0 %vm149_vm2, %v653_v23 }
 0x5aa   :  { %1787 = vmatpush3.msra.mxu0 %v2083_v1  ;;  %1794 = vmatprep.mubr.msk.f32.mxu0 %vm2025_vm1, %v2024_v0 }
 0x5ab   :  { %1788 = vmatprep.subr.mxu0 %v2024_v0 }
 0x5ac   :  { %1789 = vmatpush3.msra.mxu0 %v2085_v2 }
 0x5ad   :  { %1790 = vmatprep.subr.mxu0 %v2024_v0 }
 0x5ae   :  { %1791 = vmatpush3.msra.mxu0 %v2095_v6 }
 0x5af   :  { %1792 = vmatprep.subr.mxu0 %v2024_v0 }
 0x5b0   :  { %1793 = vmatpush3.msra.mxu0 %v2101_v7 }
 0x5b1   :  { %1815 = vmatprep.subr.mxu0 %v2024_v0 }
 0x665   :  { %v533_v63 = vpop.f32.mrf.mxu0 }
 0x666   :  { %v607_v5 = vadd.f32 %v606_v61, %v533_v63 }
 0x667   :  { %v1760_v8 = vpop.f32.mrf.mxu0 }
 0x668   :  { %v610_v9 = vadd.f32 %v2128_v11, %v607_v5 }
 0x669   :  { %v797_v30 = vpop.f32.mrf.mxu0 }
 0x66a   :  { %1885 = vtanh.f32 %v610_v9  ;;  %v1634_v12 = vmul.f32 -1.442695, %v610_v9 }
 0x66b   :  { %v1785_v31 = vpop.f32.mrf.mxu0 }
 0x66c   :  { %1887 = vpow2.f32 %v1634_v12 }
 0x677   :  { %v1886_v10 = vpop.eup %1885 }
 0x678   :  { %625 = vrot.lane.b32.xlu0 %v1886_v10, %s2026_s5 }
 0x679   :  { %v1888_v13 = vpop.eup %1887 }
 0x67a   :  { %v614_v14 = vadd.f32 1.0, %v1888_v13 }
 0x67c   :  { %1889 = vrcp.f32 %v614_v14 }
 0x689   :  { %v1890_v15 = vpop.eup %1889 }
 0x68a   :  { %v623_v19 = vmul.f32 %v1890_v15, %v621_v18 }
 0x6ea   :  { %v626_v16 = vpop.permute.xlu0 %625 }
 0x6eb   :  { %v628_v17 = vmul.f32 %v1890_v15, %v626_v16 }
 0x6ed   :  { %630 = vrot.lane.b32.xlu0 %v628_v17, %s2027_s6  ;;  %v1035_v17 = vld [vmem:[#allocation4 + $0x28] sm:$0xff] }
 0x75f   :  { %v631_v20 = vpop.permute.xlu0 %630 }
 0x760   :  { %v633_v21 = vadd.f32 %v631_v20, %v623_v19 }
 0x762   :  { %1891 = vtanh.f32 %v633_v21 }
 0x76f   :  { %v1892_v22 = vpop.eup %1891 }
 0x770   :  { %636 = vrot.lane.b32.xlu1 %v1892_v22, %s2026_s5 }
 0x774   :  { %641 = vrot.lane.b32.xlu1 %v633_v21, %s2028_s3 }
 0x7e2   :  { %v637_v24 = vpop.permute.xlu1 %636 }
 0x7e3   :  { %v639_v25 = vmul.f32 %v1890_v15, %v637_v24 }
 0x7e5   :  { %646 = vrot.lane.b32.xlu0 %v639_v25, %s2027_s6 }
 0x7e6   :  { %v642_v26 = vpop.permute.xlu1 %641 }
 0x7e7   :  { %644 = vst.msk [vmem:[#allocation3] sm:$0xff] %vm63_vm0, %v642_v26 }
 0x7ee   :  { %v809_v27 = vld [vmem:[#allocation3] sm:$0xff] }
 0x7ef   :  { %811 = vrot.lane.b32.xlu1 %v809_v27, %s2027_s6 }
 0x857   :  { %v647_v28 = vpop.permute.xlu0 %646 }
 0x858   :  { %649 = vst.msk [vmem:[#allocation2] sm:$0xff] %vm63_vm0, %v647_v28  ;;  %651 = vst.msk [vmem:[#allocation10 + $0x10] sm:$0xff] %vm63_vm0, %v647_v28 }
 0x85f   :  { %v654_v29 = vld [vmem:[#allocation2] sm:$0xff] }
 0x860   :  { %1777 = vmatmul.mubr.msk.f32.vlgmr.msra.gmra.mxu1 %vm63_vm0, %v654_v29 }
 0x861   :  { %1798 = vmatpush3.msra.mxu1 %v2087_v3  ;;  %1801 = vmatprep.mubr.msk.f32.mxu1 %vm2025_vm1, %v2024_v0  ;;  %v812_v43 = vpop.permute.xlu1 %811 }
 0x862   :  { %1799 = vmatprep.subr.mxu1 %v2024_v0 }
 0x863   :  { %1800 = vmatpush3.msra.mxu1 %v2091_v4 }
 0x864   :  { %1804 = vmatprep.subr.mxu1 %v2024_v0  ;;  %1802 = vmatmul.mubr.msk.f32.vlgmr.msra.gmra.mxu1 %vm149_vm2, %v844_v48 }
 0x865   :  { %1805 = vmatpush3.msra.mxu1 %v2083_v1  ;;  %1812 = vmatprep.mubr.msk.f32.mxu1 %vm2025_vm1, %v2024_v0 }
 0x866   :  { %1806 = vmatprep.subr.mxu1 %v2024_v0 }
 0x867   :  { %1807 = vmatpush3.msra.mxu1 %v2085_v2 }
 0x868   :  { %1808 = vmatprep.subr.mxu1 %v2024_v0 }
 0x869   :  { %1809 = vmatpush3.msra.mxu1 %v2095_v6 }
 0x86a   :  { %1810 = vmatprep.subr.mxu1 %v2024_v0 }
 0x86b   :  { %1811 = vmatpush3.msra.mxu1 %v2101_v7 }
 0x86c   :  { %1833 = vmatprep.subr.mxu1 %v2024_v0 }
 0x920   :  { %v724_v32 = vpop.f32.mrf.mxu1 }
 0x921   :  { %v798_v33 = vadd.f32 %v797_v30, %v724_v32 }
 0x922   :  { %v1778_v34 = vpop.f32.mrf.mxu1 }
 0x923   :  { %v801_v35 = vadd.f32 %v2128_v11, %v798_v33 }
 0x924   :  { %v988_v55 = vpop.f32.mrf.mxu1 }
 0x925   :  { %1893 = vtanh.f32 %v801_v35  ;;  %v1637_v37 = vmul.f32 -1.442695, %v801_v35 }
 0x926   :  { %v1803_v56 = vpop.f32.mrf.mxu1 }
 0x927   :  { %1895 = vpow2.f32 %v1637_v37 }
 0x932   :  { %v1894_v36 = vpop.eup %1893 }
 0x933   :  { %816 = vrot.lane.b32.xlu0 %v1894_v36, %s2026_s5 }
 0x934   :  { %v1896_v38 = vpop.eup %1895 }
 0x935   :  { %v805_v39 = vadd.f32 1.0, %v1896_v38 }
 0x937   :  { %1897 = vrcp.f32 %v805_v39 }
 0x944   :  { %v1898_v40 = vpop.eup %1897 }
 0x945   :  { %v814_v44 = vmul.f32 %v1898_v40, %v812_v43 }
 0x9a5   :  { %v817_v41 = vpop.permute.xlu0 %816 }
 0x9a6   :  { %v819_v42 = vmul.f32 %v1898_v40, %v817_v41 }
 0x9a8   :  { %821 = vrot.lane.b32.xlu0 %v819_v42, %s2027_s6  ;;  %v1226_v42 = vld [vmem:[#allocation4 + $0x30] sm:$0xff] }
 0xa1a   :  { %v822_v45 = vpop.permute.xlu0 %821 }
 0xa1b   :  { %v824_v46 = vadd.f32 %v822_v45, %v814_v44 }
 0xa1d   :  { %1899 = vtanh.f32 %v824_v46 }
 0xa2a   :  { %v1900_v47 = vpop.eup %1899 }
 0xa2b   :  { %827 = vrot.lane.b32.xlu1 %v1900_v47, %s2026_s5 }
 0xa2f   :  { %832 = vrot.lane.b32.xlu1 %v824_v46, %s2028_s3 }
 0xa9d   :  { %v828_v49 = vpop.permute.xlu1 %827 }
 0xa9e   :  { %v830_v50 = vmul.f32 %v1898_v40, %v828_v49 }
 0xaa0   :  { %837 = vrot.lane.b32.xlu0 %v830_v50, %s2027_s6 }
 0xaa1   :  { %v833_v51 = vpop.permute.xlu1 %832 }
 0xaa2   :  { %835 = vst.msk [vmem:[#allocation3] sm:$0xff] %vm63_vm0, %v833_v51 }
 0xaa9   :  { %v1000_v52 = vld [vmem:[#allocation3] sm:$0xff] }
 0xaaa   :  { %1002 = vrot.lane.b32.xlu1 %v1000_v52, %s2027_s6 }
 0xb12   :  { %v838_v53 = vpop.permute.xlu0 %837 }
 0xb13   :  { %840 = vst.msk [vmem:[#allocation2] sm:$0xff] %vm63_vm0, %v838_v53  ;;  %842 = vst.msk [vmem:[#allocation10 + $0x18] sm:$0xff] %vm63_vm0, %v838_v53 }
 0xb1a   :  { %v845_v54 = vld [vmem:[#allocation2] sm:$0xff] }
 0xb1b   :  { %1795 = vmatmul.mubr.msk.f32.vlgmr.msra.gmra.mxu0 %vm63_vm0, %v845_v54 }
 0xb1c   :  { %1816 = vmatpush3.msra.mxu0 %v2087_v3  ;;  %1819 = vmatprep.mubr.msk.f32.mxu0 %vm2025_vm1, %v2024_v0  ;;  %v1003_v12 = vpop.permute.xlu1 %1002 }
 0xb1d   :  { %1817 = vmatprep.subr.mxu0 %v2024_v0 }
 0xb1e   :  { %1818 = vmatpush3.msra.mxu0 %v2091_v4 }
 0xb1f   :  { %1822 = vmatprep.subr.mxu0 %v2024_v0  ;;  %1820 = vmatmul.mubr.msk.f32.vlgmr.msra.gmra.mxu0 %vm149_vm2, %v1035_v17 }
 0xb20   :  { %1823 = vmatpush3.msra.mxu0 %v2083_v1  ;;  %1830 = vmatprep.mubr.msk.f32.mxu0 %vm2025_vm1, %v2024_v0 }
 0xb21   :  { %1824 = vmatprep.subr.mxu0 %v2024_v0 }
 0xb22   :  { %1825 = vmatpush3.msra.mxu0 %v2085_v2 }
 0xb23   :  { %1826 = vmatprep.subr.mxu0 %v2024_v0 }
 0xb24   :  { %1827 = vmatpush3.msra.mxu0 %v2095_v6 }
 0xb25   :  { %1828 = vmatprep.subr.mxu0 %v2024_v0 }
 0xb26   :  { %1829 = vmatpush3.msra.mxu0 %v2101_v7 }
 0xb27   :  { %1851 = vmatprep.subr.mxu0 %v2024_v0 }
 0xbdb   :  { %v915_v57 = vpop.f32.mrf.mxu0 }
 0xbdc   :  { %v989_v58 = vadd.f32 %v988_v55, %v915_v57 }
 0xbdd   :  { %v1796_v59 = vpop.f32.mrf.mxu0 }
 0xbde   :  { %v992_v60 = vadd.f32 %v2128_v11, %v989_v58 }
 0xbdf   :  { %v1179_v24 = vpop.f32.mrf.mxu0 }
 0xbe0   :  { %1901 = vtanh.f32 %v992_v60  ;;  %v1640_v62 = vmul.f32 -1.442695, %v992_v60  ;;  %v1417_v60 = vld [vmem:[#allocation4 + $0x38] sm:$0xff] }
 0xbe1   :  { %v1821_v25 = vpop.f32.mrf.mxu0 }
 0xbe2   :  { %1903 = vpow2.f32 %v1640_v62 }
 0xbed   :  { %v1902_v61 = vpop.eup %1901 }
 0xbee   :  { %1007 = vrot.lane.b32.xlu0 %v1902_v61, %s2026_s5 }
 0xbef   :  { %v1904_v63 = vpop.eup %1903 }
 0xbf0   :  { %v996_v5 = vadd.f32 1.0, %v1904_v63 }
 0xbf2   :  { %1905 = vrcp.f32 %v996_v5 }
 0xbff   :  { %v1906_v8 = vpop.eup %1905 }
 0xc00   :  { %v1005_v13 = vmul.f32 %v1906_v8, %v1003_v12 }
 0xc60   :  { %v1008_v9 = vpop.permute.xlu0 %1007 }
 0xc61   :  { %v1010_v10 = vmul.f32 %v1906_v8, %v1008_v9 }
 0xc63   :  { %1012 = vrot.lane.b32.xlu0 %v1010_v10, %s2027_s6 }
 0xcd5   :  { %v1013_v14 = vpop.permute.xlu0 %1012 }
 0xcd6   :  { %v1015_v15 = vadd.f32 %v1013_v14, %v1005_v13 }
 0xcd8   :  { %1907 = vtanh.f32 %v1015_v15 }
 0xce5   :  { %v1908_v16 = vpop.eup %1907 }
 0xce6   :  { %1018 = vrot.lane.b32.xlu1 %v1908_v16, %s2026_s5 }
 0xcea   :  { %1023 = vrot.lane.b32.xlu1 %v1015_v15, %s2028_s3 }
 0xd58   :  { %v1019_v18 = vpop.permute.xlu1 %1018 }
 0xd59   :  { %v1021_v19 = vmul.f32 %v1906_v8, %v1019_v18 }
 0xd5b   :  { %1028 = vrot.lane.b32.xlu0 %v1021_v19, %s2027_s6 }
 0xd5c   :  { %v1024_v20 = vpop.permute.xlu1 %1023 }
 0xd5d   :  { %1026 = vst.msk [vmem:[#allocation3] sm:$0xff] %vm63_vm0, %v1024_v20 }
 0xd64   :  { %v1191_v21 = vld [vmem:[#allocation3] sm:$0xff] }
 0xd65   :  { %1193 = vrot.lane.b32.xlu1 %v1191_v21, %s2027_s6 }
 0xdcd   :  { %v1029_v22 = vpop.permute.xlu0 %1028 }
 0xdce   :  { %1031 = vst.msk [vmem:[#allocation2] sm:$0xff] %vm63_vm0, %v1029_v22  ;;  %1033 = vst.msk [vmem:[#allocation10 + $0x20] sm:$0xff] %vm63_vm0, %v1029_v22 }
 0xdd5   :  { %v1036_v23 = vld [vmem:[#allocation2] sm:$0xff] }
 0xdd6   :  { %1813 = vmatmul.mubr.msk.f32.vlgmr.msra.gmra.mxu1 %vm63_vm0, %v1036_v23 }
 0xdd7   :  { %1834 = vmatpush3.msra.mxu1 %v2087_v3  ;;  %1837 = vmatprep.mubr.msk.f32.mxu1 %vm2025_vm1, %v2024_v0  ;;  %v1194_v37 = vpop.permute.xlu1 %1193 }
 0xdd8   :  { %1835 = vmatprep.subr.mxu1 %v2024_v0 }
 0xdd9   :  { %1836 = vmatpush3.msra.mxu1 %v2091_v4 }
 0xdda   :  { %1840 = vmatprep.subr.mxu1 %v2024_v0  ;;  %1838 = vmatmul.mubr.msk.f32.vlgmr.msra.gmra.mxu1 %vm149_vm2, %v1226_v42 }
 0xddb   :  { %1841 = vmatpush3.msra.mxu1 %v2083_v1  ;;  %1848 = vmatprep.mubr.msk.f32.mxu1 %vm2025_vm1, %v2024_v0 }
 0xddc   :  { %1842 = vmatprep.subr.mxu1 %v2024_v0 }
 0xddd   :  { %1843 = vmatpush3.msra.mxu1 %v2085_v2 }
 0xdde   :  { %1844 = vmatprep.subr.mxu1 %v2024_v0 }
 0xddf   :  { %1845 = vmatpush3.msra.mxu1 %v2095_v6 }
 0xde0   :  { %1846 = vmatprep.subr.mxu1 %v2024_v0 }
 0xde1   :  { %1847 = vmatpush3.msra.mxu1 %v2101_v7 }
 0xe96   :  { %v1106_v26 = vpop.f32.mrf.mxu1 }
 0xe97   :  { %v1180_v27 = vadd.f32 %v1179_v24, %v1106_v26 }
 0xe98   :  { %v1814_v28 = vpop.f32.mrf.mxu1 }
 0xe99   :  { %v1183_v29 = vadd.f32 %v2128_v11, %v1180_v27 }
 0xe9a   :  { %v1370_v6 = vpop.f32.mrf.mxu1 }
 0xe9b   :  { %1909 = vtanh.f32 %v1183_v29  ;;  %v1643_v31 = vmul.f32 -1.442695, %v1183_v29 }
 0xe9c   :  { %v1839_v7 = vpop.f32.mrf.mxu1 }
 0xe9d   :  { %1911 = vpow2.f32 %v1643_v31 }
 0xea8   :  { %v1910_v30 = vpop.eup %1909 }
 0xea9   :  { %1198 = vrot.lane.b32.xlu0 %v1910_v30, %s2026_s5 }
 0xeaa   :  { %v1912_v32 = vpop.eup %1911 }
 0xeab   :  { %v1187_v33 = vadd.f32 1.0, %v1912_v32 }
 0xead   :  { %1913 = vrcp.f32 %v1187_v33 }
 0xeba   :  { %v1914_v34 = vpop.eup %1913 }
 0xebb   :  { %v1196_v38 = vmul.f32 %v1914_v34, %v1194_v37 }
 0xf1b   :  { %v1199_v35 = vpop.permute.xlu0 %1198 }
 0xf1c   :  { %v1201_v36 = vmul.f32 %v1914_v34, %v1199_v35 }
 0xf1e   :  { %1203 = vrot.lane.b32.xlu0 %v1201_v36, %s2027_s6 }
 0xf90   :  { %v1204_v39 = vpop.permute.xlu0 %1203 }
 0xf91   :  { %v1206_v40 = vadd.f32 %v1204_v39, %v1196_v38 }
 0xf93   :  { %1915 = vtanh.f32 %v1206_v40 }
 0xfa0   :  { %v1916_v41 = vpop.eup %1915 }
 0xfa1   :  { %1209 = vrot.lane.b32.xlu1 %v1916_v41, %s2026_s5 }
 0xfa5   :  { %1214 = vrot.lane.b32.xlu1 %v1206_v40, %s2028_s3 }
0x1013   :  { %v1210_v43 = vpop.permute.xlu1 %1209 }
0x1014   :  { %v1212_v44 = vmul.f32 %v1914_v34, %v1210_v43 }
0x1016   :  { %1219 = vrot.lane.b32.xlu0 %v1212_v44, %s2027_s6 }
0x1017   :  { %v1215_v1 = vpop.permute.xlu1 %1214 }
0x1018   :  { %1217 = vst.msk [vmem:[#allocation3] sm:$0xff] %vm63_vm0, %v1215_v1 }
0x101f   :  { %v1382_v45 = vld [vmem:[#allocation3] sm:$0xff] }
0x1020   :  { %1384 = vrot.lane.b32.xlu1 %v1382_v45, %s2027_s6 }
0x1088   :  { %v1220_v46 = vpop.permute.xlu0 %1219 }
0x1089   :  { %1222 = vst.msk [vmem:[#allocation2] sm:$0xff] %vm63_vm0, %v1220_v46  ;;  %1224 = vst.msk [vmem:[#allocation10 + $0x28] sm:$0xff] %vm63_vm0, %v1220_v46 }
0x1090   :  { %v1227_v2 = vld [vmem:[#allocation2] sm:$0xff] }
0x1091   :  { %1831 = vmatmul.mubr.msk.f32.vlgmr.msra.gmra.mxu0 %vm63_vm0, %v1227_v2 }
0x1092   :  { %1852 = vmatpush3.msra.mxu0 %v2087_v3  ;;  %1855 = vmatprep.mubr.msk.f32.mxu0 %vm2025_vm1, %v2024_v0 }
0x1093   :  { %1853 = vmatprep.subr.mxu0 %v2024_v0 }
0x1094   :  { %1854 = vmatpush3.msra.mxu0 %v2091_v4  ;;  %v1385_v4 = vpop.permute.xlu1 %1384 }
0x1095   :  { %1856 = vmatmul.mubr.msk.f32.vlgmr.msra.gmra.mxu0 %vm149_vm2, %v1417_v60 }
0x1151   :  { %v1297_v47 = vpop.f32.mrf.mxu0 }
0x1152   :  { %v1371_v48 = vadd.f32 %v1370_v6, %v1297_v47 }
0x1153   :  { %v1832_v49 = vpop.f32.mrf.mxu0 }
0x1154   :  { %v1374_v50 = vadd.f32 %v2128_v11, %v1371_v48 }
0x1155   :  { %v1561_v10 = vpop.f32.mrf.mxu0 }
0x1156   :  { %1917 = vtanh.f32 %v1374_v50  ;;  %v1646_v52 = vmul.f32 -1.442695, %v1374_v50 }
0x1157   :  { %v1857_v12 = vpop.f32.mrf.mxu0 }
0x1158   :  { %1919 = vpow2.f32 %v1646_v52 }
0x1163   :  { %v1918_v51 = vpop.eup %1917 }
0x1164   :  { %1389 = vrot.lane.b32.xlu0 %v1918_v51, %s2026_s5 }
0x1165   :  { %v1920_v3 = vpop.eup %1919 }
0x1166   :  { %v1378_v53 = vadd.f32 1.0, %v1920_v3 }
0x1168   :  { %1921 = vrcp.f32 %v1378_v53 }
0x1175   :  { %v1922_v54 = vpop.eup %1921 }
0x1176   :  { %v1387_v56 = vmul.f32 %v1922_v54, %v1385_v4 }
0x11d6   :  { %v1390_v0 = vpop.permute.xlu0 %1389 }
0x11d7   :  { %v1392_v55 = vmul.f32 %v1922_v54, %v1390_v0 }
0x11d9   :  { %1394 = vrot.lane.b32.xlu0 %v1392_v55, %s2027_s6 }
0x124b   :  { %v1395_v57 = vpop.permute.xlu0 %1394 }
0x124c   :  { %v1397_v58 = vadd.f32 %v1395_v57, %v1387_v56 }
0x124e   :  { %1923 = vtanh.f32 %v1397_v58 }
0x125b   :  { %v1924_v59 = vpop.eup %1923 }
0x125c   :  { %1400 = vrot.lane.b32.xlu1 %v1924_v59, %s2026_s5 }
0x1260   :  { %1405 = vrot.lane.b32.xlu1 %v1397_v58, %s2028_s3 }
0x12ce   :  { %v1401_v61 = vpop.permute.xlu1 %1400 }
0x12cf   :  { %v1403_v62 = vmul.f32 %v1922_v54, %v1401_v61 }
0x12d1   :  { %1410 = vrot.lane.b32.xlu0 %v1403_v62, %s2027_s6 }
0x12d2   :  { %v1406_v63 = vpop.permute.xlu1 %1405 }
0x12d3   :  { %1408 = vst.msk [vmem:[#allocation3] sm:$0xff] %vm63_vm0, %v1406_v63 }
0x12da   :  { %v1573_v5 = vld [vmem:[#allocation3] sm:$0xff] }
0x12db   :  { %1575 = vrot.lane.b32.xlu1 %v1573_v5, %s2027_s6 }
0x1343   :  { %v1411_v8 = vpop.permute.xlu0 %1410 }
0x1344   :  { %1413 = vst.msk [vmem:[#allocation2] sm:$0xff] %vm63_vm0, %v1411_v8  ;;  %1415 = vst.msk [vmem:[#allocation10 + $0x30] sm:$0xff] %vm63_vm0, %v1411_v8 }
0x134b   :  { %v1418_v9 = vld [vmem:[#allocation2] sm:$0xff] }
0x134c   :  { %1849 = vmatmul.mubr.msk.f32.vlgmr.msra.gmra.mxu1 %vm63_vm0, %v1418_v9 }
0x134d   :  { %v1576_v24 = vpop.permute.xlu1 %1575 }
0x140c   :  { %v1488_v13 = vpop.f32.mrf.mxu1 }
0x140d   :  { %v1562_v14 = vadd.f32 %v1561_v10, %v1488_v13 }
0x140e   :  { %v1850_v15 = vpop.f32.mrf.mxu1 }
0x140f   :  { %v1565_v16 = vadd.f32 %v2128_v11, %v1562_v14 }
0x1411   :  { %1925 = vtanh.f32 %v1565_v16  ;;  %v1649_v18 = vmul.f32 -1.442695, %v1565_v16 }
0x1413   :  { %1927 = vpow2.f32 %v1649_v18 }
0x141e   :  { %v1926_v17 = vpop.eup %1925 }
0x141f   :  { %1580 = vrot.lane.b32.xlu0 %v1926_v17, %s2026_s5 }
0x1420   :  { %v1928_v19 = vpop.eup %1927 }
0x1421   :  { %v1569_v20 = vadd.f32 1.0, %v1928_v19 }
0x1423   :  { %1929 = vrcp.f32 %v1569_v20 }
0x1430   :  { %v1930_v21 = vpop.eup %1929 }
0x1431   :  { %v1578_v25 = vmul.f32 %v1930_v21, %v1576_v24 }
0x1491   :  { %v1581_v22 = vpop.permute.xlu0 %1580 }
0x1492   :  { %v1583_v23 = vmul.f32 %v1930_v21, %v1581_v22 }
0x1494   :  { %1585 = vrot.lane.b32.xlu0 %v1583_v23, %s2027_s6 }
0x1506   :  { %v1586_v26 = vpop.permute.xlu0 %1585 }
0x1507   :  { %v1588_v27 = vadd.f32 %v1586_v26, %v1578_v25 }
0x1509   :  { %1931 = vtanh.f32 %v1588_v27 }
0x1516   :  { %v1932_v11 = vpop.eup %1931 }
0x1517   :  { %1591 = vrot.lane.b32.xlu1 %v1932_v11, %s2026_s5 }
0x151b   :  { %1596 = vrot.lane.b32.xlu1 %v1588_v27, %s2028_s3 }
0x1589   :  { %v1592_v28 = vpop.permute.xlu1 %1591 }
0x158a   :  { %v1594_v29 = vmul.f32 %v1930_v21, %v1592_v28 }
0x158c   :  { %1601 = vrot.lane.b32.xlu0 %v1594_v29, %s2027_s6 }
0x158d   :  { %v1597_v30 = vpop.permute.xlu1 %1596 }
0x158e   :  { %1599 = vst.msk [vmem:[#allocation3] sm:$0xff] %vm63_vm0, %v1597_v30 }
0x15fe   :  { %v1602_v31 = vpop.permute.xlu0 %1601 }
0x15ff   :  { %1604 = vst.msk [vmem:[#allocation2] sm:$0xff] %vm63_vm0, %v1602_v31  ;;  %1606 = vst.msk [vmem:[#allocation10 + $0x38] sm:$0xff] %vm63_vm0, %v1602_v31 }
0x1600   :  { %2004 = shalt.err (!%p2001_p5)
}
0x1601   :  { %1618 = dma.vmem_to_hbm [thread:$0]  %s1613_s8, 1024, %s2328_s4, [#allocation6], %s2021_s20, %s2021_s20, %s2022_s21  }
0x1602   :  { %2017 = dma.done.wait [#allocation6], 1024  }
0x1603   :  { %2018 = vsyncadd [#allocation6], 4294966272 }
0x1604   :  { %1622 = vsyncpa [#allocation5], 1 }
0x1605   :  { %1623 = vsyncpa [#allocation8], 1 }
0x1606   :  { %1624 = vsyncpa [#allocation6], 1 }

</bundles_post_ra>
